<compile_context>
chip_gen: v7x
topology: tpu7x:2x2x1
jax: 0.10.0
libtpu: 0.0.40
codegen_flags: <defaults>
</compile_context>

<pallas_src>
import functools

import jax
import jax.numpy as jnp
from jax.experimental import pallas as pl
from jax.experimental.pallas import tpu as pltpu

# ---------------- config (small, consistent with the module) ----------------
NUM_LAYERS = 2          # num_layers
INPUT_DIM = 32          # input_dim   (sparse_input_dim = 0, no label embeddings)
HIDDEN_DIM = 64         # hidden_dim
OUTPUT_DIM = 1          # output_dim  (squeeze(1) -> [N])
HIDDEN_MULT = 2         # hidden_dim_multiplier
HIDDEN_FF = HIDDEN_DIM * HIDDEN_MULT   # 128 == lane width
LN_EPS = 1e-5
N_NODES = 128
ROW_TILE = N_NODES      # single grid step: whole problem in one pipeline stage

# ---- packed small-vector layout: one (VEC_ROWS, HIDDEN_FF) f32 array -------
ROW_B_IN = 0                       # b_in           (first HIDDEN_DIM lanes)
ROW_OUT_LN_W = 1                   # output LN gamma
ROW_OUT_LN_B = 2                   # output LN beta
ROW_W_OUT = 3                      # w_out[:, 0]    (first HIDDEN_DIM lanes)
ROW_B_OUT = 4                      # b_out scalar   (lane 0)
ROW_LN_W = 5                       # per-layer LN gamma   [L rows]
ROW_LN_B = ROW_LN_W + NUM_LAYERS   # per-layer LN beta    [L rows]
ROW_B1 = ROW_LN_B + NUM_LAYERS     # per-layer FFN bias1  [L rows, full 128]
ROW_B2 = ROW_B1 + NUM_LAYERS       # per-layer FFN bias2  [L rows]
VEC_ROWS = 16                      # pad 5 + 4*L = 13 rows up to 16 (sublane mult.)


def _gelu(x):
    # exact (erf-based) GELU, matching torch.nn.GELU() default
    return 0.5 * x * (1.0 + jax.lax.erf(x * (1.0 / jnp.sqrt(2.0).astype(x.dtype))))


def _layer_norm(h, w, b, eps=LN_EPS):
    mean = jnp.mean(h, axis=-1, keepdims=True)
    var = jnp.mean((h - mean) ** 2, axis=-1, keepdims=True)
    return (h - mean) * jax.lax.rsqrt(var + eps) * w + b


def model_kernel(x_ref, vec_ref, w_in_ref, w1_ref, w2_ref, o_ref):
    x = x_ref[...]                                              # (T, INPUT_DIM)

    # input_linear + dropout(identity) + GELU
    b_in = vec_ref[ROW_B_IN:ROW_B_IN + 1, :HIDDEN_DIM]          # (1, H)
    h = jnp.dot(x, w_in_ref[...], preferred_element_type=jnp.float32) + b_in
    h = _gelu(h)

    # residual FeedForward blocks (static unroll; slice refs per layer so only
    # one layer's weights are live in vregs at a time)
    for l in range(NUM_LAYERS):
        ln_w = vec_ref[ROW_LN_W + l:ROW_LN_W + l + 1, :HIDDEN_DIM]
        ln_b = vec_ref[ROW_LN_B + l:ROW_LN_B + l + 1, :HIDDEN_DIM]
        b1 = vec_ref[ROW_B1 + l:ROW_B1 + l + 1, :]              # (1, HF)
        b2 = vec_ref[ROW_B2 + l:ROW_B2 + l + 1, :HIDDEN_DIM]    # (1, H)

        r = _layer_norm(h, ln_w, ln_b)
        r = _gelu(jnp.dot(r, w1_ref[l], preferred_element_type=jnp.float32) + b1)
        r = jnp.dot(r, w2_ref[l], preferred_element_type=jnp.float32) + b2
        # dropout (eval) = identity
        h = h + r

    # output LayerNorm
    h = _layer_norm(h,
                    vec_ref[ROW_OUT_LN_W:ROW_OUT_LN_W + 1, :HIDDEN_DIM],
                    vec_ref[ROW_OUT_LN_B:ROW_OUT_LN_B + 1, :HIDDEN_DIM])

    # output_linear with output_dim == 1: VPU multiply + cross-lane (XLU)
    # reduction instead of a 1-lane-wide MXU matmul.
    w_out_row = vec_ref[ROW_W_OUT:ROW_W_OUT + 1, :HIDDEN_DIM]   # (1, H)
    b_out = vec_ref[ROW_B_OUT:ROW_B_OUT + 1, 0:1]               # (1, 1)
    o = jnp.sum(h * w_out_row, axis=-1, keepdims=True) + b_out  # (T, 1)
    o_ref[...] = o.astype(o_ref.dtype)


def _pack_vec(params):
    """Pack all small per-layer vectors into one (VEC_ROWS, HIDDEN_FF) array."""
    vec = jnp.zeros((VEC_ROWS, HIDDEN_FF), jnp.float32)
    vec = vec.at[ROW_B_IN, :HIDDEN_DIM].set(params["b_in"])
    vec = vec.at[ROW_OUT_LN_W, :HIDDEN_DIM].set(params["out_ln_w"])
    vec = vec.at[ROW_OUT_LN_B, :HIDDEN_DIM].set(params["out_ln_b"])
    vec = vec.at[ROW_W_OUT, :HIDDEN_DIM].set(params["w_out"][:, 0])
    vec = vec.at[ROW_B_OUT, 0].set(params["b_out"][0])
    vec = vec.at[ROW_LN_W:ROW_LN_W + NUM_LAYERS, :HIDDEN_DIM].set(params["ln_w"])
    vec = vec.at[ROW_LN_B:ROW_LN_B + NUM_LAYERS, :HIDDEN_DIM].set(params["ln_b"])
    vec = vec.at[ROW_B1:ROW_B1 + NUM_LAYERS, :].set(params["b1"])
    vec = vec.at[ROW_B2:ROW_B2 + NUM_LAYERS, :HIDDEN_DIM].set(params["b2"])
    return vec


@functools.partial(jax.jit, static_argnames=())
def model_forward(x, params):
    n, _ = x.shape
    assert n % ROW_TILE == 0
    grid = (n // ROW_TILE,)  # == (1,) at these shapes; >1 row tiles only pay
    # off on v7x's dual TensorCore for much larger N.

    vec = _pack_vec(params)

    def full_spec(shape):
        nd = len(shape)
        return pl.BlockSpec(shape, lambda i, _nd=nd: (0,) * _nd)

    in_specs = [
        pl.BlockSpec((ROW_TILE, INPUT_DIM), lambda i: (i, 0)),   # x
        full_spec(vec.shape),                                    # packed vectors
        full_spec(params["w_in"].shape),                         # (I, H)
        full_spec(params["w1"].shape),                           # (L, H, HF)
        full_spec(params["w2"].shape),                           # (L, HF, H)
    ]
    out_spec = pl.BlockSpec((ROW_TILE, OUTPUT_DIM), lambda i: (i, 0))

    out = pl.pallas_call(
        model_kernel,
        out_shape=jax.ShapeDtypeStruct((n, OUTPUT_DIM), jnp.float32),
        grid_spec=pltpu.PrefetchScalarGridSpec(
            num_scalar_prefetch=0,
            grid=grid,
            in_specs=in_specs,
            out_specs=out_spec,
        ),
        compiler_params=pltpu.CompilerParams(
            dimension_semantics=("parallel",)),
    )(x, vec, params["w_in"], params["w1"], params["w2"])

    # torch: self.output_linear(x).squeeze(1)  -> [N] when output_dim == 1
    return jnp.squeeze(out, axis=1)


def init_params(key):
    ks = jax.random.split(key, 4)
    scale = 0.05
    params = {
        "w_in": scale * jax.random.normal(ks[0], (INPUT_DIM, HIDDEN_DIM), jnp.float32),
        "b_in": jnp.zeros((HIDDEN_DIM,), jnp.float32),
        "ln_w": jnp.ones((NUM_LAYERS, HIDDEN_DIM), jnp.float32),
        "ln_b": jnp.zeros((NUM_LAYERS, HIDDEN_DIM), jnp.float32),
        "w1": scale * jax.random.normal(ks[1], (NUM_LAYERS, HIDDEN_DIM, HIDDEN_FF), jnp.float32),
        "b1": jnp.zeros((NUM_LAYERS, HIDDEN_FF), jnp.float32),
        "w2": scale * jax.random.normal(ks[2], (NUM_LAYERS, HIDDEN_FF, HIDDEN_DIM), jnp.float32),
        "b2": jnp.zeros((NUM_LAYERS, HIDDEN_DIM), jnp.float32),
        "out_ln_w": jnp.ones((HIDDEN_DIM,), jnp.float32),
        "out_ln_b": jnp.zeros((HIDDEN_DIM,), jnp.float32),
        "w_out": scale * jax.random.normal(ks[3], (HIDDEN_DIM, OUTPUT_DIM), jnp.float32),
        "b_out": jnp.zeros((OUTPUT_DIM,), jnp.float32),
    }
    return params


def reference_forward(x, p):
    # pure-JAX reference (same math, no Pallas) for a sanity check
    h = _gelu(x @ p["w_in"] + p["b_in"][None, :])
    for l in range(NUM_LAYERS):
        r = _layer_norm(h, p["ln_w"][l], p["ln_b"][l])
        r = _gelu(r @ p["w1"][l] + p["b1"][l])
        r = r @ p["w2"][l] + p["b2"][l]
        h = h + r
    h = _layer_norm(h, p["out_ln_w"], p["out_ln_b"])
    return jnp.squeeze(h @ p["w_out"] + p["b_out"][None, :], axis=1)


if __name__ == "__main__":
    key = jax.random.PRNGKey(0)
    kx, kp = jax.random.split(key)
    x = jax.random.normal(kx, (N_NODES, INPUT_DIM), jnp.float32)
    params = init_params(kp)

    # graph arg unused for model_name='ResNet' (FeedForwardModule ignores it)
    out = model_forward(x, params)
    out = jax.block_until_ready(out)

    ref = reference_forward(x, params)
    assert out.shape == (N_NODES,)
    assert jnp.allclose(out, ref, atol=1e-4, rtol=1e-4)

    # TODO(synk): GCN/SAGE/GAT/GT variants need graph message passing (sparse
    # neighbor aggregation), label-embedding lookup and BatchNorm; only the
    # 'ResNet' (pure FeedForward) eval-mode path is implemented here.
    print("KERNEL_OK")
</pallas_src>

<mosaic_0001>
module attributes {stable_mosaic.version = 11 : i64} {
  func.func @model_kernel(%arg0: i32, %arg1: memref<128x32xf32, #tpu.memory_space<vmem>>, %arg2: memref<16x128xf32, #tpu.memory_space<vmem>>, %arg3: memref<32x64xf32, #tpu.memory_space<vmem>>, %arg4: memref<2x64x128xf32, #tpu.memory_space<vmem>>, %arg5: memref<2x128x64xf32, #tpu.memory_space<vmem>>, %arg6: memref<128x1xf32, #tpu.memory_space<vmem>>) attributes {dimension_semantics = [#tpu.dimension_semantics<parallel>], iteration_bounds = array<i64: 1>, scalar_prefetch = 0 : i64, scratch_operands = 0 : i64, tpu.core_type = #tpu.core_type<tc>, window_params = [{transform_indices = @transform_0, window_bounds = array<i64: 128, 32>}, {pipeline_mode = #tpu.pipeline_mode<synchronous>, transform_indices = @transform_1, window_bounds = array<i64: 16, 128>}, {pipeline_mode = #tpu.pipeline_mode<synchronous>, transform_indices = @transform_2, window_bounds = array<i64: 32, 64>}, {pipeline_mode = #tpu.pipeline_mode<synchronous>, transform_indices = @transform_3, window_bounds = array<i64: 2, 64, 128>}, {pipeline_mode = #tpu.pipeline_mode<synchronous>, transform_indices = @transform_4, window_bounds = array<i64: 2, 128, 64>}, {transform_indices = @transform_5, window_bounds = array<i64: 128, 1>}]} {
    %c0 = arith.constant 0 : index
    %c0_0 = arith.constant 0 : index
    %0 = vector.load %arg1[%c0, %c0_0] : memref<128x32xf32, #tpu.memory_space<vmem>>, vector<128x32xf32>
    %c0_1 = arith.constant 0 : index
    %c0_2 = arith.constant 0 : index
    %1 = vector.load %arg2[%c0_1, %c0_2] : memref<16x128xf32, #tpu.memory_space<vmem>>, vector<1x64xf32>
    %c0_3 = arith.constant 0 : index
    %c0_4 = arith.constant 0 : index
    %2 = vector.load %arg3[%c0_3, %c0_4] : memref<32x64xf32, #tpu.memory_space<vmem>>, vector<32x64xf32>
    %cst = arith.constant dense<0.000000e+00> : vector<128x64xf32>
    %3 = tpu.matmul %0, %2, %cst {dimension_numbers = #tpu.dot_dimension_numbers<[1], [0], [0], [1], [0, 0, 1, 1], [], []>} : vector<128x32xf32>, vector<32x64xf32>, vector<128x64xf32> -> vector<128x64xf32>
    %4 = vector.broadcast %1 : vector<1x64xf32> to vector<128x64xf32>
    %5 = arith.addf %3, %4 : vector<128x64xf32>
    %cst_5 = arith.constant 5.000000e-01 : f32
    %6 = vector.broadcast %cst_5 : f32 to vector<128x64xf32>
    %7 = arith.mulf %6, %5 : vector<128x64xf32>
    %cst_6 = arith.constant 2.000000e+00 : f32
    %8 = math.sqrt %cst_6 : f32
    %cst_7 = arith.constant 1.000000e+00 : f32
    %9 = arith.divf %cst_7, %8 : f32
    %10 = vector.broadcast %9 : f32 to vector<128x64xf32>
    %11 = arith.mulf %5, %10 : vector<128x64xf32>
    %12 = math.erf %11 : vector<128x64xf32>
    %cst_8 = arith.constant 1.000000e+00 : f32
    %13 = vector.broadcast %cst_8 : f32 to vector<128x64xf32>
    %14 = arith.addf %13, %12 : vector<128x64xf32>
    %15 = arith.mulf %7, %14 : vector<128x64xf32>
    %c5 = arith.constant 5 : index
    %c0_9 = arith.constant 0 : index
    %16 = vector.load %arg2[%c5, %c0_9] : memref<16x128xf32, #tpu.memory_space<vmem>>, vector<1x64xf32>
    %c7 = arith.constant 7 : index
    %c0_10 = arith.constant 0 : index
    %17 = vector.load %arg2[%c7, %c0_10] : memref<16x128xf32, #tpu.memory_space<vmem>>, vector<1x64xf32>
    %c9 = arith.constant 9 : index
    %c0_11 = arith.constant 0 : index
    %18 = vector.load %arg2[%c9, %c0_11] : memref<16x128xf32, #tpu.memory_space<vmem>>, vector<1x128xf32>
    %c11 = arith.constant 11 : index
    %c0_12 = arith.constant 0 : index
    %19 = vector.load %arg2[%c11, %c0_12] : memref<16x128xf32, #tpu.memory_space<vmem>>, vector<1x64xf32>
    %cst_13 = arith.constant dense<0.000000e+00> : vector<128xf32>
    %20 = vector.multi_reduction <add>, %15, %cst_13 [1] : vector<128x64xf32> to vector<128xf32>
    %21 = vector.shape_cast %20 : vector<128xf32> to vector<128x1xf32>
    %cst_14 = arith.constant 6.400000e+01 : f32
    %22 = vector.broadcast %cst_14 : f32 to vector<128x1xf32>
    %23 = arith.divf %21, %22 : vector<128x1xf32>
    %24 = vector.broadcast %23 : vector<128x1xf32> to vector<128x64xf32>
    %25 = arith.subf %15, %24 : vector<128x64xf32>
    %26 = arith.mulf %25, %25 : vector<128x64xf32>
    %cst_15 = arith.constant dense<0.000000e+00> : vector<128xf32>
    %27 = vector.multi_reduction <add>, %26, %cst_15 [1] : vector<128x64xf32> to vector<128xf32>
    %28 = vector.shape_cast %27 : vector<128xf32> to vector<128x1xf32>
    %cst_16 = arith.constant 6.400000e+01 : f32
    %29 = vector.broadcast %cst_16 : f32 to vector<128x1xf32>
    %30 = arith.divf %28, %29 : vector<128x1xf32>
    %31 = vector.broadcast %23 : vector<128x1xf32> to vector<128x64xf32>
    %32 = arith.subf %15, %31 : vector<128x64xf32>
    %cst_17 = arith.constant 9.99999974E-6 : f32
    %33 = vector.broadcast %cst_17 : f32 to vector<128x1xf32>
    %34 = arith.addf %30, %33 : vector<128x1xf32>
    %35 = math.rsqrt %34 : vector<128x1xf32>
    %36 = vector.broadcast %35 : vector<128x1xf32> to vector<128x64xf32>
    %37 = arith.mulf %32, %36 : vector<128x64xf32>
    %38 = vector.broadcast %16 : vector<1x64xf32> to vector<128x64xf32>
    %39 = arith.mulf %37, %38 : vector<128x64xf32>
    %40 = vector.broadcast %17 : vector<1x64xf32> to vector<128x64xf32>
    %41 = arith.addf %39, %40 : vector<128x64xf32>
    %c0_18 = arith.constant 0 : index
    %c0_19 = arith.constant 0 : index
    %c0_20 = arith.constant 0 : index
    %42 = vector.load %arg4[%c0_18, %c0_19, %c0_20] : memref<2x64x128xf32, #tpu.memory_space<vmem>>, vector<1x64x128xf32>
    %43 = vector.shape_cast %42 : vector<1x64x128xf32> to vector<64x128xf32>
    %cst_21 = arith.constant dense<0.000000e+00> : vector<128x128xf32>
    %44 = tpu.matmul %41, %43, %cst_21 {dimension_numbers = #tpu.dot_dimension_numbers<[1], [0], [0], [1], [0, 0, 1, 1], [], []>} : vector<128x64xf32>, vector<64x128xf32>, vector<128x128xf32> -> vector<128x128xf32>
    %45 = vector.broadcast %18 : vector<1x128xf32> to vector<128x128xf32>
    %46 = arith.addf %44, %45 : vector<128x128xf32>
    %cst_22 = arith.constant 5.000000e-01 : f32
    %47 = vector.broadcast %cst_22 : f32 to vector<128x128xf32>
    %48 = arith.mulf %47, %46 : vector<128x128xf32>
    %cst_23 = arith.constant 2.000000e+00 : f32
    %49 = math.sqrt %cst_23 : f32
    %cst_24 = arith.constant 1.000000e+00 : f32
    %50 = arith.divf %cst_24, %49 : f32
    %51 = vector.broadcast %50 : f32 to vector<128x128xf32>
    %52 = arith.mulf %46, %51 : vector<128x128xf32>
    %53 = math.erf %52 : vector<128x128xf32>
    %cst_25 = arith.constant 1.000000e+00 : f32
    %54 = vector.broadcast %cst_25 : f32 to vector<128x128xf32>
    %55 = arith.addf %54, %53 : vector<128x128xf32>
    %56 = arith.mulf %48, %55 : vector<128x128xf32>
    %c0_26 = arith.constant 0 : index
    %c0_27 = arith.constant 0 : index
    %c0_28 = arith.constant 0 : index
    %57 = vector.load %arg5[%c0_26, %c0_27, %c0_28] : memref<2x128x64xf32, #tpu.memory_space<vmem>>, vector<1x128x64xf32>
    %58 = vector.shape_cast %57 : vector<1x128x64xf32> to vector<128x64xf32>
    %cst_29 = arith.constant dense<0.000000e+00> : vector<128x64xf32>
    %59 = tpu.matmul %56, %58, %cst_29 {dimension_numbers = #tpu.dot_dimension_numbers<[1], [0], [0], [1], [0, 0, 1, 1], [], []>} : vector<128x128xf32>, vector<128x64xf32>, vector<128x64xf32> -> vector<128x64xf32>
    %60 = vector.broadcast %19 : vector<1x64xf32> to vector<128x64xf32>
    %61 = arith.addf %59, %60 : vector<128x64xf32>
    %62 = arith.addf %15, %61 : vector<128x64xf32>
    %c6 = arith.constant 6 : index
    %c0_30 = arith.constant 0 : index
    %63 = vector.load %arg2[%c6, %c0_30] : memref<16x128xf32, #tpu.memory_space<vmem>>, vector<1x64xf32>
    %c8 = arith.constant 8 : index
    %c0_31 = arith.constant 0 : index
    %64 = vector.load %arg2[%c8, %c0_31] : memref<16x128xf32, #tpu.memory_space<vmem>>, vector<1x64xf32>
    %c10 = arith.constant 10 : index
    %c0_32 = arith.constant 0 : index
    %65 = vector.load %arg2[%c10, %c0_32] : memref<16x128xf32, #tpu.memory_space<vmem>>, vector<1x128xf32>
    %c12 = arith.constant 12 : index
    %c0_33 = arith.constant 0 : index
    %66 = vector.load %arg2[%c12, %c0_33] : memref<16x128xf32, #tpu.memory_space<vmem>>, vector<1x64xf32>
    %cst_34 = arith.constant dense<0.000000e+00> : vector<128xf32>
    %67 = vector.multi_reduction <add>, %62, %cst_34 [1] : vector<128x64xf32> to vector<128xf32>
    %68 = vector.shape_cast %67 : vector<128xf32> to vector<128x1xf32>
    %cst_35 = arith.constant 6.400000e+01 : f32
    %69 = vector.broadcast %cst_35 : f32 to vector<128x1xf32>
    %70 = arith.divf %68, %69 : vector<128x1xf32>
    %71 = vector.broadcast %70 : vector<128x1xf32> to vector<128x64xf32>
    %72 = arith.subf %62, %71 : vector<128x64xf32>
    %73 = arith.mulf %72, %72 : vector<128x64xf32>
    %cst_36 = arith.constant dense<0.000000e+00> : vector<128xf32>
    %74 = vector.multi_reduction <add>, %73, %cst_36 [1] : vector<128x64xf32> to vector<128xf32>
    %75 = vector.shape_cast %74 : vector<128xf32> to vector<128x1xf32>
    %cst_37 = arith.constant 6.400000e+01 : f32
    %76 = vector.broadcast %cst_37 : f32 to vector<128x1xf32>
    %77 = arith.divf %75, %76 : vector<128x1xf32>
    %78 = vector.broadcast %70 : vector<128x1xf32> to vector<128x64xf32>
    %79 = arith.subf %62, %78 : vector<128x64xf32>
    %cst_38 = arith.constant 9.99999974E-6 : f32
    %80 = vector.broadcast %cst_38 : f32 to vector<128x1xf32>
    %81 = arith.addf %77, %80 : vector<128x1xf32>
    %82 = math.rsqrt %81 : vector<128x1xf32>
    %83 = vector.broadcast %82 : vector<128x1xf32> to vector<128x64xf32>
    %84 = arith.mulf %79, %83 : vector<128x64xf32>
    %85 = vector.broadcast %63 : vector<1x64xf32> to vector<128x64xf32>
    %86 = arith.mulf %84, %85 : vector<128x64xf32>
    %87 = vector.broadcast %64 : vector<1x64xf32> to vector<128x64xf32>
    %88 = arith.addf %86, %87 : vector<128x64xf32>
    %c1 = arith.constant 1 : index
    %c0_39 = arith.constant 0 : index
    %c0_40 = arith.constant 0 : index
    %89 = vector.load %arg4[%c1, %c0_39, %c0_40] : memref<2x64x128xf32, #tpu.memory_space<vmem>>, vector<1x64x128xf32>
    %90 = vector.shape_cast %89 : vector<1x64x128xf32> to vector<64x128xf32>
    %cst_41 = arith.constant dense<0.000000e+00> : vector<128x128xf32>
    %91 = tpu.matmul %88, %90, %cst_41 {dimension_numbers = #tpu.dot_dimension_numbers<[1], [0], [0], [1], [0, 0, 1, 1], [], []>} : vector<128x64xf32>, vector<64x128xf32>, vector<128x128xf32> -> vector<128x128xf32>
    %92 = vector.broadcast %65 : vector<1x128xf32> to vector<128x128xf32>
    %93 = arith.addf %91, %92 : vector<128x128xf32>
    %cst_42 = arith.constant 5.000000e-01 : f32
    %94 = vector.broadcast %cst_42 : f32 to vector<128x128xf32>
    %95 = arith.mulf %94, %93 : vector<128x128xf32>
    %cst_43 = arith.constant 2.000000e+00 : f32
    %96 = math.sqrt %cst_43 : f32
    %cst_44 = arith.constant 1.000000e+00 : f32
    %97 = arith.divf %cst_44, %96 : f32
    %98 = vector.broadcast %97 : f32 to vector<128x128xf32>
    %99 = arith.mulf %93, %98 : vector<128x128xf32>
    %100 = math.erf %99 : vector<128x128xf32>
    %cst_45 = arith.constant 1.000000e+00 : f32
    %101 = vector.broadcast %cst_45 : f32 to vector<128x128xf32>
    %102 = arith.addf %101, %100 : vector<128x128xf32>
    %103 = arith.mulf %95, %102 : vector<128x128xf32>
    %c1_46 = arith.constant 1 : index
    %c0_47 = arith.constant 0 : index
    %c0_48 = arith.constant 0 : index
    %104 = vector.load %arg5[%c1_46, %c0_47, %c0_48] : memref<2x128x64xf32, #tpu.memory_space<vmem>>, vector<1x128x64xf32>
    %105 = vector.shape_cast %104 : vector<1x128x64xf32> to vector<128x64xf32>
    %cst_49 = arith.constant dense<0.000000e+00> : vector<128x64xf32>
    %106 = tpu.matmul %103, %105, %cst_49 {dimension_numbers = #tpu.dot_dimension_numbers<[1], [0], [0], [1], [0, 0, 1, 1], [], []>} : vector<128x128xf32>, vector<128x64xf32>, vector<128x64xf32> -> vector<128x64xf32>
    %107 = vector.broadcast %66 : vector<1x64xf32> to vector<128x64xf32>
    %108 = arith.addf %106, %107 : vector<128x64xf32>
    %109 = arith.addf %62, %108 : vector<128x64xf32>
    %c1_50 = arith.constant 1 : index
    %c0_51 = arith.constant 0 : index
    %110 = vector.load %arg2[%c1_50, %c0_51] : memref<16x128xf32, #tpu.memory_space<vmem>>, vector<1x64xf32>
    %c2 = arith.constant 2 : index
    %c0_52 = arith.constant 0 : index
    %111 = vector.load %arg2[%c2, %c0_52] : memref<16x128xf32, #tpu.memory_space<vmem>>, vector<1x64xf32>
    %cst_53 = arith.constant dense<0.000000e+00> : vector<128xf32>
    %112 = vector.multi_reduction <add>, %109, %cst_53 [1] : vector<128x64xf32> to vector<128xf32>
    %113 = vector.shape_cast %112 : vector<128xf32> to vector<128x1xf32>
    %cst_54 = arith.constant 6.400000e+01 : f32
    %114 = vector.broadcast %cst_54 : f32 to vector<128x1xf32>
    %115 = arith.divf %113, %114 : vector<128x1xf32>
    %116 = vector.broadcast %115 : vector<128x1xf32> to vector<128x64xf32>
    %117 = arith.subf %109, %116 : vector<128x64xf32>
    %118 = arith.mulf %117, %117 : vector<128x64xf32>
    %cst_55 = arith.constant dense<0.000000e+00> : vector<128xf32>
    %119 = vector.multi_reduction <add>, %118, %cst_55 [1] : vector<128x64xf32> to vector<128xf32>
    %120 = vector.shape_cast %119 : vector<128xf32> to vector<128x1xf32>
    %cst_56 = arith.constant 6.400000e+01 : f32
    %121 = vector.broadcast %cst_56 : f32 to vector<128x1xf32>
    %122 = arith.divf %120, %121 : vector<128x1xf32>
    %123 = vector.broadcast %115 : vector<128x1xf32> to vector<128x64xf32>
    %124 = arith.subf %109, %123 : vector<128x64xf32>
    %cst_57 = arith.constant 9.99999974E-6 : f32
    %125 = vector.broadcast %cst_57 : f32 to vector<128x1xf32>
    %126 = arith.addf %122, %125 : vector<128x1xf32>
    %127 = math.rsqrt %126 : vector<128x1xf32>
    %128 = vector.broadcast %127 : vector<128x1xf32> to vector<128x64xf32>
    %129 = arith.mulf %124, %128 : vector<128x64xf32>
    %130 = vector.broadcast %110 : vector<1x64xf32> to vector<128x64xf32>
    %131 = arith.mulf %129, %130 : vector<128x64xf32>
    %132 = vector.broadcast %111 : vector<1x64xf32> to vector<128x64xf32>
    %133 = arith.addf %131, %132 : vector<128x64xf32>
    %c3 = arith.constant 3 : index
    %c0_58 = arith.constant 0 : index
    %134 = vector.load %arg2[%c3, %c0_58] : memref<16x128xf32, #tpu.memory_space<vmem>>, vector<1x64xf32>
    %c4 = arith.constant 4 : index
    %c0_59 = arith.constant 0 : index
    %135 = vector.load %arg2[%c4, %c0_59] : memref<16x128xf32, #tpu.memory_space<vmem>>, vector<1x1xf32>
    %136 = vector.broadcast %134 : vector<1x64xf32> to vector<128x64xf32>
    %137 = arith.mulf %133, %136 : vector<128x64xf32>
    %cst_60 = arith.constant dense<0.000000e+00> : vector<128xf32>
    %138 = vector.multi_reduction <add>, %137, %cst_60 [1] : vector<128x64xf32> to vector<128xf32>
    %139 = vector.shape_cast %138 : vector<128xf32> to vector<128x1xf32>
    %140 = vector.broadcast %135 : vector<1x1xf32> to vector<128x1xf32>
    %141 = arith.addf %139, %140 : vector<128x1xf32>
    %c0_61 = arith.constant 0 : index
    %c0_62 = arith.constant 0 : index
    %142 = vector.load %arg6[%c0_61, %c0_62] : memref<128x1xf32, #tpu.memory_space<vmem>>, vector<128x1xf32>
    tpu.vector_store %arg6[%c0_61, %c0_62], %141 {strides = array<i32>} : memref<128x1xf32, #tpu.memory_space<vmem>>, vector<128x1xf32>,
    return
  }
  func.func @transform_0(%arg0: i32) -> (i32, i32) {
    %c0_i32 = arith.constant 0 : i32
    %c0_i32_0 = arith.constant 0 : i32
    return %arg0, %c0_i32 : i32, i32
  }
  func.func @transform_1(%arg0: i32) -> (i32, i32) {
    %c0_i32 = arith.constant 0 : i32
    %c0_i32_0 = arith.constant 0 : i32
    %c0_i32_1 = arith.constant 0 : i32
    return %c0_i32, %c0_i32_0 : i32, i32
  }
  func.func @transform_2(%arg0: i32) -> (i32, i32) {
    %c0_i32 = arith.constant 0 : i32
    %c0_i32_0 = arith.constant 0 : i32
    %c0_i32_1 = arith.constant 0 : i32
    return %c0_i32, %c0_i32_0 : i32, i32
  }
  func.func @transform_3(%arg0: i32) -> (i32, i32, i32) {
    %c0_i32 = arith.constant 0 : i32
    %c0_i32_0 = arith.constant 0 : i32
    %c0_i32_1 = arith.constant 0 : i32
    %c0_i32_2 = arith.constant 0 : i32
    return %c0_i32, %c0_i32_0, %c0_i32_1 : i32, i32, i32
  }
  func.func @transform_4(%arg0: i32) -> (i32, i32, i32) {
    %c0_i32 = arith.constant 0 : i32
    %c0_i32_0 = arith.constant 0 : i32
    %c0_i32_1 = arith.constant 0 : i32
    %c0_i32_2 = arith.constant 0 : i32
    return %c0_i32, %c0_i32_0, %c0_i32_1 : i32, i32, i32
  }
  func.func @transform_5(%arg0: i32) -> (i32, i32) {
    %c0_i32 = arith.constant 0 : i32
    %c0_i32_0 = arith.constant 0 : i32
    return %arg0, %c0_i32 : i32, i32
  }
}

</mosaic_0001>

<bundles_post_ra>
// kernel: model_forward.1
= control target key start
LH: loop header
LB: loop body
LE: loop exit
PB: predicated region body
PF: predicated region fallthrough
CT: control target
= control target key end

     0   :  { %vm45_vm0 = vcmask 261120   ;;  %vm323_vm1 = vcmask 523264   ;;  %vm2099_vm2 = vcmask 7168   ;;  %s4112_s2 = inlined_call_operand.vmem [shape: f32[32,64], index: 2, kind: input, shape index: {}]   ;;  %s4113_s0 = inlined_call_operand.vmem [shape: f32[128,32], index: 0, kind: input, shape index: {}]   ;;  %s4114_s1 = inlined_call_operand.vmem [shape: f32[16,128], index: 1, kind: input, shape index: {}]   ;;  %s4115_s3 = inlined_call_operand.vmem [shape: f32[2,64,128], index: 3, kind: input, shape index: {}]   ;;  %s4116_s4 = inlined_call_operand.vmem [shape: f32[2,128,64], index: 4, kind: input, shape index: {}]   ;;  %s4117_s5 = inlined_call_operand.vmem [shape: f32[128,1], index: 5, kind: output, shape index: {}]  }
   0x1   :  { %v37_v0 = vld [vmem:[%s4112_s2] sm:$0xff]  ;;  %v38_v1 = vld [vmem:[%s4112_s2 + $0x8] sm:$0xff]  ;;  %v39_v2 = vld [vmem:[%s4112_s2 + $0x10] sm:$0xff] }
   0x2   :  { %v2561_v3 = vpack.c.bf16 %v38_v1, %v37_v0  ;;  %v40_v4 = vld [vmem:[%s4112_s2 + $0x18] sm:$0xff]  ;;  %v20_v5 = vld [vmem:[%s4113_s0] sm:$0xff]  ;;  %v21_v7 = vld [vmem:[%s4113_s0 + $0x8] sm:$0xff] }
   0x3   :  { %v2565_v6 = vpack.c.bf16 %v40_v4, %v39_v2  ;;  %2345 = vmatprep.mubr.msk.f32.mxu0 %vm45_vm0, %v20_v5  ;;  %v22_v8 = vld [vmem:[%s4113_s0 + $0x10] sm:$0xff]  ;;  %v23_v9 = vld [vmem:[%s4113_s0 + $0x18] sm:$0xff]  ;;  %v24_v10 = vld [vmem:[%s4113_s0 + $0x20] sm:$0xff] }
   0x4   :  { %2562 = vmatprep.subr.bf16.mxu0 %v2561_v3  ;;  %v25_v11 = vld [vmem:[%s4113_s0 + $0x28] sm:$0xff]  ;;  %v26_v12 = vld [vmem:[%s4113_s0 + $0x30] sm:$0xff]  ;;  %v27_v13 = vld [vmem:[%s4113_s0 + $0x38] sm:$0xff] }
   0x5   :  { %2564 = vmatpush3.bf16.msra.mxu0 %v2561_v3  ;;  %v28_v14 = vld [vmem:[%s4113_s0 + $0x40] sm:$0xff]  ;;  %v29_v15 = vld [vmem:[%s4113_s0 + $0x48] sm:$0xff]  ;;  %v30_v16 = vld [vmem:[%s4113_s0 + $0x50] sm:$0xff] }
   0x6   :  { %2566 = vmatprep.subr.bf16.mxu0 %v2565_v6  ;;  %v31_v17 = vld [vmem:[%s4113_s0 + $0x58] sm:$0xff]  ;;  %v32_v18 = vld [vmem:[%s4113_s0 + $0x60] sm:$0xff]  ;;  %v33_v19 = vld [vmem:[%s4113_s0 + $0x68] sm:$0xff] }
   0x7   :  { %v34_v20 = vld [vmem:[%s4113_s0 + $0x70] sm:$0xff]  ;;  %v35_v21 = vld [vmem:[%s4113_s0 + $0x78] sm:$0xff]  ;;  %v2982_v22 = vld [vmem:[%s4114_s1] ss:$0 sm:$0xff] }
   0x9   :  { %2568 = vmatpush3.bf16.msra.mxu0 %v2565_v6 }
   0xc   :  { %2346 = vmatmul.mubr.msk.f32.vlgmr.msra.gmra.mrb[0].mxu0 %vm45_vm0, %v21_v7 }
   0xd   :  { %2348 = vmatprep.mubr.msk.f32.mxu0 %vm45_vm0, %v22_v8 }
  0x10   :  { %2349 = vmatmul.mubr.msk.f32.gmra.mrb[2].mxu0 %vm45_vm0, %v23_v9 }
  0x11   :  { %2351 = vmatprep.mubr.msk.f32.mxu0 %vm45_vm0, %v24_v10 }
  0x14   :  { %2352 = vmatmul.mubr.msk.f32.gmra.mrb[4].mxu0 %vm45_vm0, %v25_v11 }
  0x15   :  { %2354 = vmatprep.mubr.msk.f32.mxu0 %vm45_vm0, %v26_v12 }
  0x18   :  { %2355 = vmatmul.mubr.msk.f32.gmra.mrb[6].mxu0 %vm45_vm0, %v27_v13 }
  0x19   :  { %2357 = vmatprep.mubr.msk.f32.mxu0 %vm45_vm0, %v28_v14 }
  0x1c   :  { %2358 = vmatmul.mubr.msk.f32.gmra.mrb[8].mxu0 %vm45_vm0, %v29_v15 }
  0x1d   :  { %2360 = vmatprep.mubr.msk.f32.mxu0 %vm45_vm0, %v30_v16 }
  0x20   :  { %2361 = vmatmul.mubr.msk.f32.gmra.mrb[10].mxu0 %vm45_vm0, %v31_v17 }
  0x21   :  { %2363 = vmatprep.mubr.msk.f32.mxu0 %vm45_vm0, %v32_v18 }
  0x24   :  { %2364 = vmatmul.mubr.msk.f32.gmra.mrb[12].mxu0 %vm45_vm0, %v33_v19 }
  0x25   :  { %2366 = vmatprep.mubr.msk.f32.mxu0 %vm45_vm0, %v34_v20 }
  0x28   :  { %2367 = vmatmul.mubr.msk.f32.gmra.mrb[14].mxu0 %vm45_vm0, %v35_v21 }
  0xdf   :  { %v2347_v23 = vpop.f32.mrb[0].mxu0 }
  0xe0   :  { %v166_v24 = vadd.f32 %v2347_v23, %v2982_v22  ;;  %v160_v25 = vpop.f32.mrb[1].mxu0 }
  0xe1   :  { %v161_v26 = vadd.f32 %v2982_v22, %v160_v25 }
  0xe2   :  { %v256_v27 = vmul.f32 0.70710677, %v166_v24  ;;  %v240_v55 = vmul.f32 0.5, %v166_v24 }
  0xe3   :  { %v255_v28 = vmul.f32 0.70710677, %v161_v26  ;;  %v2350_v29 = vpop.f32.mrb[2].mxu0  ;;  %v239_v51 = vmul.f32 0.5, %v161_v26 }
  0xe4   :  { %2681 = verf.f32 %v256_v27  ;;  %v176_v30 = vadd.f32 %v2350_v29, %v2982_v22  ;;  %v170_v31 = vpop.f32.mrb[3].mxu0 }
  0xe5   :  { %2683 = verf.f32 %v255_v28  ;;  %v171_v32 = vadd.f32 %v2982_v22, %v170_v31 }
  0xe6   :  { %v258_v33 = vmul.f32 0.70710677, %v176_v30  ;;  %v242_v6 = vmul.f32 0.5, %v176_v30 }
  0xe7   :  { %v257_v34 = vmul.f32 0.70710677, %v171_v32  ;;  %v2353_v35 = vpop.f32.mrb[4].mxu0  ;;  %v241_v63 = vmul.f32 0.5, %v171_v32 }
  0xe8   :  { %2685 = verf.f32 %v258_v33  ;;  %v186_v36 = vadd.f32 %v2353_v35, %v2982_v22  ;;  %v180_v37 = vpop.f32.mrb[5].mxu0 }
  0xe9   :  { %2687 = verf.f32 %v257_v34  ;;  %v181_v38 = vadd.f32 %v2982_v22, %v180_v37 }
  0xea   :  { %v260_v39 = vmul.f32 0.70710677, %v186_v36  ;;  %v244_v23 = vmul.f32 0.5, %v186_v36 }
  0xeb   :  { %v259_v40 = vmul.f32 0.70710677, %v181_v38  ;;  %v2356_v41 = vpop.f32.mrb[6].mxu0  ;;  %v243_v9 = vmul.f32 0.5, %v181_v38 }
  0xec   :  { %2689 = verf.f32 %v260_v39  ;;  %v2991_v42 = vadd.f32 %v2356_v41, %v2982_v22  ;;  %v190_v43 = vpop.f32.mrb[7].mxu0 }
  0xed   :  { %2691 = verf.f32 %v259_v40  ;;  %v191_v44 = vadd.f32 %v2982_v22, %v190_v43 }
  0xee   :  { %v2682_v45 = vpop.eup %2681  ;;  %v262_v46 = vmul.f32 0.70710677, %v2991_v42  ;;  %v246_v39 = vmul.f32 0.5, %v2991_v42 }
  0xef   :  { %v2684_v47 = vpop.eup %2683  ;;  %v288_v48 = vadd.f32 1.0, %v2682_v45  ;;  %v261_v49 = vmul.f32 0.70710677, %v191_v44  ;;  %v2359_v50 = vpop.f32.mrb[8].mxu0  ;;  %v245_v27 = vmul.f32 0.5, %v191_v44 }
  0xf0   :  { %v287_v52 = vadd.f32 1.0, %v2684_v47  ;;  %2693 = verf.f32 %v262_v46  ;;  %v2996_v53 = vadd.f32 %v2359_v50, %v2982_v22  ;;  %v200_v54 = vpop.f32.mrb[9].mxu0 }
  0xf1   :  { %2695 = verf.f32 %v261_v49  ;;  %v2999_v56 = vadd.f32 %v2982_v22, %v200_v54  ;;  %v3004_v61 = vmul.f32 %v288_v48, %v240_v55 }
  0xf2   :  { %v2686_v57 = vpop.eup %2685  ;;  %v264_v58 = vmul.f32 0.70710677, %v2996_v53  ;;  %v3002_v59 = vmul.f32 %v287_v52, %v239_v51  ;;  %v248_v52 = vmul.f32 0.5, %v2996_v53 }
  0xf3   :  { %v2688_v60 = vpop.eup %2687  ;;  %v290_v62 = vadd.f32 1.0, %v2686_v57  ;;  %v263_v0 = vmul.f32 0.70710677, %v2999_v56  ;;  %v2362_v1 = vpop.f32.mrb[10].mxu0  ;;  %v327_v17 = vsel %vm323_vm1, %v3004_v61, 0.0  ;;  %v247_v47 = vmul.f32 0.5, %v2999_v56 }
  0xf4   :  { %v289_v2 = vadd.f32 1.0, %v2688_v60  ;;  %2697 = verf.f32 %v264_v58  ;;  %v3008_v3 = vadd.f32 %v2362_v1, %v2982_v22  ;;  %v210_v4 = vpop.f32.mrb[11].mxu0  ;;  %v324_v5 = vsel %vm323_vm1, %v3002_v59, 0.0 }
  0xf5   :  { %2699 = verf.f32 %v263_v0  ;;  %v211_v7 = vadd.f32 %v2982_v22, %v210_v4  ;;  %325 = vadd.xlane.f32.xlu0 %v324_v5  ;;  %v3016_v13 = vmul.f32 %v290_v62, %v242_v6 }
  0xf6   :  { %v2690_v8 = vpop.eup %2689  ;;  %v266_v10 = vmul.f32 0.70710677, %v3008_v3  ;;  %v3014_v11 = vmul.f32 %v289_v2, %v241_v63  ;;  %v250_v0 = vmul.f32 0.5, %v3008_v3 }
  0xf7   :  { %v2692_v12 = vpop.eup %2691  ;;  %v292_v14 = vadd.f32 1.0, %v2690_v8  ;;  %v265_v15 = vmul.f32 0.70710677, %v211_v7  ;;  %v2365_v16 = vpop.f32.mrb[12].mxu0  ;;  %v333_v34 = vsel %vm323_vm1, %v3016_v13, 0.0  ;;  %v249_v57 = vmul.f32 0.5, %v211_v7 }
  0xf8   :  { %v291_v18 = vadd.f32 1.0, %v2692_v12  ;;  %2701 = verf.f32 %v266_v10  ;;  %v3021_v19 = vadd.f32 %v2365_v16, %v2982_v22  ;;  %v220_v20 = vpop.f32.mrb[13].mxu0  ;;  %v330_v21 = vsel %vm323_vm1, %v3014_v11, 0.0 }
  0xf9   :  { %2703 = verf.f32 %v265_v15  ;;  %v221_v24 = vadd.f32 %v2982_v22, %v220_v20  ;;  %331 = vadd.xlane.f32.xlu1 %v330_v21  ;;  %328 = vadd.xlane.f32.xlu0 %v327_v17  ;;  %v3029_v30 = vmul.f32 %v292_v14, %v244_v23 }
  0xfa   :  { %v2694_v25 = vpop.eup %2693  ;;  %v3026_v26 = vmul.f32 %v291_v18, %v243_v9  ;;  %v268_v28 = vmul.f32 0.70710677, %v3021_v19  ;;  %v252_v10 = vmul.f32 0.5, %v3021_v19 }
  0xfb   :  { %v2696_v29 = vpop.eup %2695  ;;  %v294_v31 = vadd.f32 1.0, %v2694_v25  ;;  %v267_v32 = vmul.f32 0.70710677, %v221_v24  ;;  %v2368_v33 = vpop.f32.mrb[14].mxu0  ;;  %v339_v49 = vsel %vm323_vm1, %v3029_v30, 0.0  ;;  %v251_v5 = vmul.f32 0.5, %v221_v24 }
  0xfc   :  { %v293_v35 = vadd.f32 1.0, %v2696_v29  ;;  %2705 = verf.f32 %v268_v28  ;;  %v236_v36 = vadd.f32 %v2368_v33, %v2982_v22  ;;  %v230_v37 = vpop.f32.mrb[15].mxu0  ;;  %v336_v38 = vsel %vm323_vm1, %v3026_v26, 0.0 }
  0xfd   :  { %2707 = verf.f32 %v267_v32  ;;  %v231_v40 = vadd.f32 %v2982_v22, %v230_v37  ;;  %334 = vadd.xlane.f32.xlu1 %v333_v34  ;;  %337 = vadd.xlane.f32.xlu0 %v336_v38  ;;  %v3040_v46 = vmul.f32 %v294_v31, %v246_v39 }
  0xfe   :  { %v2698_v41 = vpop.eup %2697  ;;  %v3038_v43 = vmul.f32 %v293_v35, %v245_v27  ;;  %v270_v44 = vmul.f32 0.70710677, %v236_v36  ;;  %v254_v23 = vmul.f32 0.5, %v236_v36 }
  0xff   :  { %v2700_v45 = vpop.eup %2699  ;;  %v269_v48 = vmul.f32 0.70710677, %v231_v40  ;;  %v296_v50 = vadd.f32 1.0, %v2698_v41  ;;  %v345_v62 = vsel %vm323_vm1, %v3040_v46, 0.0  ;;  %v253_v15 = vmul.f32 0.5, %v231_v40 }
 0x100   :  { %v295_v42 = vadd.f32 1.0, %v2700_v45  ;;  %2709 = verf.f32 %v270_v44  ;;  %v342_v22 = vsel %vm323_vm1, %v3038_v43, 0.0 }
 0x101   :  { %2711 = verf.f32 %v269_v48  ;;  %340 = vadd.xlane.f32.xlu1 %v339_v49  ;;  %343 = vadd.xlane.f32.xlu0 %v342_v22  ;;  %v3050_v58 = vmul.f32 %v296_v50, %v248_v52 }
 0x102   :  { %v2702_v51 = vpop.eup %2701  ;;  %v3048_v54 = vmul.f32 %v295_v42, %v247_v47 }
 0x103   :  { %v2704_v55 = vpop.eup %2703  ;;  %v298_v56 = vadd.f32 1.0, %v2702_v51  ;;  %v351_v8 = vsel %vm323_vm1, %v3050_v58, 0.0 }
 0x104   :  { %v297_v60 = vadd.f32 1.0, %v2704_v55  ;;  %v348_v63 = vsel %vm323_vm1, %v3048_v54, 0.0 }
 0x105   :  { %346 = vadd.xlane.f32.xlu1 %v345_v62  ;;  %349 = vadd.xlane.f32.xlu0 %v348_v63  ;;  %v3059_v4 = vmul.f32 %v298_v56, %v250_v0 }
 0x106   :  { %v2706_v1 = vpop.eup %2705  ;;  %v3057_v53 = vmul.f32 %v297_v60, %v249_v57 }
 0x107   :  { %v2708_v2 = vpop.eup %2707  ;;  %v300_v6 = vadd.f32 1.0, %v2706_v1  ;;  %v357_v16 = vsel %vm323_vm1, %v3059_v4, 0.0 }
 0x108   :  { %v299_v7 = vadd.f32 1.0, %v2708_v2  ;;  %v354_v9 = vsel %vm323_vm1, %v3057_v53, 0.0 }
 0x109   :  { %352 = vadd.xlane.f32.xlu1 %v351_v8  ;;  %355 = vadd.xlane.f32.xlu0 %v354_v9  ;;  %v3070_v17 = vmul.f32 %v300_v6, %v252_v10 }
 0x10a   :  { %v2710_v3 = vpop.eup %2709  ;;  %v3066_v12 = vmul.f32 %v299_v7, %v251_v5 }
 0x10b   :  { %v2712_v14 = vpop.eup %2711  ;;  %v302_v18 = vadd.f32 1.0, %v2710_v3  ;;  %v363_v25 = vsel %vm323_vm1, %v3070_v17, 0.0 }
 0x10c   :  { %v301_v20 = vadd.f32 1.0, %v2712_v14  ;;  %v360_v21 = vsel %vm323_vm1, %v3066_v12, 0.0 }
 0x10d   :  { %358 = vadd.xlane.f32.xlu1 %v357_v16  ;;  %361 = vadd.xlane.f32.xlu0 %v360_v21  ;;  %v3076_v19 = vmul.f32 %v302_v18, %v254_v23 }
 0x10e   :  { %v3074_v24 = vmul.f32 %v301_v20, %v253_v15 }
 0x10f   :  { %v369_v28 = vsel %vm323_vm1, %v3076_v19, 0.0 }
 0x110   :  { %v366_v27 = vsel %vm323_vm1, %v3074_v24, 0.0 }
 0x111   :  { %364 = vadd.xlane.f32.xlu1 %v363_v25  ;;  %367 = vadd.xlane.f32.xlu0 %v366_v27 }
 0x115   :  { %370 = vadd.xlane.f32.xlu1 %v369_v28 }
 0x182   :  { %v326_v29 = vpop.xlane.xlu0 %325 }
 0x183   :  { %v373_v31 = vmul.f32 0.015625, %v326_v29 }
 0x185   :  { %v3085_v32 = vsub.f32 %v3002_v59, %v373_v31 }
 0x186   :  { %v332_v33 = vpop.xlane.xlu1 %331  ;;  %v329_v34 = vpop.xlane.xlu0 %328 }
 0x187   :  { %v375_v35 = vmul.f32 0.015625, %v332_v33  ;;  %v374_v36 = vmul.f32 0.015625, %v329_v34  ;;  %v405_v37 = vmul.f32 %v3085_v32, %v3085_v32 }
 0x189   :  { %v3090_v38 = vsub.f32 %v3014_v11, %v375_v35  ;;  %v3093_v39 = vsub.f32 %v3004_v61, %v374_v36  ;;  %v421_v40 = vsel %vm323_vm1, %v405_v37, 0.0 }
 0x18a   :  { %v335_v41 = vpop.xlane.xlu1 %334  ;;  %422 = vadd.xlane.f32.xlu0 %v421_v40  ;;  %v338_v44 = vpop.xlane.xlu0 %337 }
 0x18b   :  { %v376_v45 = vmul.f32 0.015625, %v335_v41  ;;  %v377_v47 = vmul.f32 0.015625, %v338_v44  ;;  %v407_v48 = vmul.f32 %v3090_v38, %v3090_v38  ;;  %v406_v49 = vmul.f32 %v3093_v39, %v3093_v39 }
 0x18d   :  { %v3101_v50 = vsub.f32 %v3016_v13, %v376_v45  ;;  %v3104_v42 = vsub.f32 %v3026_v26, %v377_v47  ;;  %v427_v22 = vsel %vm323_vm1, %v407_v48, 0.0  ;;  %v424_v51 = vsel %vm323_vm1, %v406_v49, 0.0 }
 0x18e   :  { %v341_v52 = vpop.xlane.xlu1 %340  ;;  %428 = vadd.xlane.f32.xlu0 %v427_v22  ;;  %425 = vadd.xlane.f32.xlu1 %v424_v51  ;;  %v344_v55 = vpop.xlane.xlu0 %343 }
 0x18f   :  { %v378_v56 = vmul.f32 0.015625, %v341_v52  ;;  %v379_v57 = vmul.f32 0.015625, %v344_v55  ;;  %v408_v60 = vmul.f32 %v3101_v50, %v3101_v50  ;;  %v409_v62 = vmul.f32 %v3104_v42, %v3104_v42 }
 0x191   :  { %v3113_v63 = vsub.f32 %v3029_v30, %v378_v56  ;;  %v3116_v0 = vsub.f32 %v3038_v43, %v379_v57  ;;  %v430_v1 = vsel %vm323_vm1, %v408_v60, 0.0  ;;  %v433_v2 = vsel %vm323_vm1, %v409_v62, 0.0  ;;  %v573_v57 = vld [vmem:[%s4115_s3] sm:$0xff]  ;;  %v574_v60 = vld [vmem:[%s4115_s3 + $0x8] sm:$0xff] }
 0x192   :  { %v347_v5 = vpop.xlane.xlu1 %346  ;;  %431 = vadd.xlane.f32.xlu1 %v430_v1  ;;  %434 = vadd.xlane.f32.xlu0 %v433_v2  ;;  %v350_v6 = vpop.xlane.xlu0 %349  ;;  %v2569_v62 = vpack.c.bf16 %v574_v60, %v573_v57 }
 0x193   :  { %v380_v7 = vmul.f32 0.015625, %v347_v5  ;;  %v381_v8 = vmul.f32 0.015625, %v350_v6  ;;  %v410_v9 = vmul.f32 %v3113_v63, %v3113_v63  ;;  %v411_v3 = vmul.f32 %v3116_v0, %v3116_v0 }
 0x194   :  { %2570 = vmatprep.subr.bf16.mxu1 %v2569_v62 }
 0x195   :  { %v3125_v10 = vsub.f32 %v3040_v46, %v380_v7  ;;  %v3128_v14 = vsub.f32 %v3048_v54, %v381_v8  ;;  %v436_v15 = vsel %vm323_vm1, %v410_v9, 0.0  ;;  %v439_v16 = vsel %vm323_vm1, %v411_v3, 0.0  ;;  %2572 = vmatpush3.bf16.msra.mxu1 %v2569_v62 }
 0x196   :  { %v353_v18 = vpop.xlane.xlu1 %352  ;;  %437 = vadd.xlane.f32.xlu1 %v436_v15  ;;  %440 = vadd.xlane.f32.xlu0 %v439_v16  ;;  %v356_v20 = vpop.xlane.xlu0 %355  ;;  %v575_v15 = vld [vmem:[%s4115_s3 + $0x10] sm:$0xff]  ;;  %v576_v16 = vld [vmem:[%s4115_s3 + $0x18] sm:$0xff] }
 0x197   :  { %v382_v21 = vmul.f32 0.015625, %v353_v18  ;;  %v383_v23 = vmul.f32 0.015625, %v356_v20  ;;  %v412_v25 = vmul.f32 %v3125_v10, %v3125_v10  ;;  %v413_v27 = vmul.f32 %v3128_v14, %v3128_v14 }
 0x198   :  { %v2573_v18 = vpack.c.bf16 %v576_v16, %v575_v15 }
 0x199   :  { %v3137_v28 = vsub.f32 %v3050_v58, %v382_v21  ;;  %v3140_v29 = vsub.f32 %v3057_v53, %v383_v23  ;;  %v442_v31 = vsel %vm323_vm1, %v412_v25, 0.0  ;;  %v445_v33 = vsel %vm323_vm1, %v413_v27, 0.0  ;;  %v577_v27 = vld [vmem:[%s4115_s3 + $0x20] sm:$0xff] }
 0x19a   :  { %v359_v34 = vpop.xlane.xlu1 %358  ;;  %443 = vadd.xlane.f32.xlu1 %v442_v31  ;;  %446 = vadd.xlane.f32.xlu0 %v445_v33  ;;  %v362_v35 = vpop.xlane.xlu0 %361  ;;  %v578_v31 = vld [vmem:[%s4115_s3 + $0x28] sm:$0xff] }
 0x19b   :  { %v384_v36 = vmul.f32 0.015625, %v359_v34  ;;  %v385_v37 = vmul.f32 0.015625, %v362_v35  ;;  %v414_v40 = vmul.f32 %v3137_v28, %v3137_v28  ;;  %v415_v41 = vmul.f32 %v3140_v29, %v3140_v29  ;;  %2574 = vmatprep.subr.bf16.mxu1 %v2573_v18  ;;  %v579_v35 = vld [vmem:[%s4115_s3 + $0x30] sm:$0xff] }
 0x19c   :  { %2576 = vmatpush3.bf16.msra.mxu1 %v2573_v18  ;;  %v2577_v33 = vpack.c.bf16 %v578_v31, %v577_v27 }
 0x19d   :  { %v3149_v44 = vsub.f32 %v3059_v4, %v384_v36  ;;  %v3152_v45 = vsub.f32 %v3066_v12, %v385_v37  ;;  %v448_v47 = vsel %vm323_vm1, %v414_v40, 0.0  ;;  %v451_v48 = vsel %vm323_vm1, %v415_v41, 0.0  ;;  %v580_v36 = vld [vmem:[%s4115_s3 + $0x38] sm:$0xff]  ;;  %v858_v40 = vld [vmem:[%s4116_s4] sm:$0xff]  ;;  %v859_v41 = vld [vmem:[%s4116_s4 + $0x8] sm:$0xff] }
 0x19e   :  { %v365_v49 = vpop.xlane.xlu1 %364  ;;  %449 = vadd.xlane.f32.xlu1 %v448_v47  ;;  %452 = vadd.xlane.f32.xlu0 %v451_v48  ;;  %v368_v22 = vpop.xlane.xlu0 %367  ;;  %v2581_v37 = vpack.c.bf16 %v580_v36, %v579_v35  ;;  %v860_v47 = vld [vmem:[%s4116_s4 + $0x10] sm:$0xff]  ;;  %v2585_v48 = vpack.c.bf16 %v859_v41, %v858_v40 }
 0x19f   :  { %v386_v51 = vmul.f32 0.015625, %v365_v49  ;;  %v387_v52 = vmul.f32 0.015625, %v368_v22  ;;  %v416_v55 = vmul.f32 %v3149_v44, %v3149_v44  ;;  %v417_v56 = vmul.f32 %v3152_v45, %v3152_v45  ;;  %2578 = vmatprep.subr.bf16.mxu1 %v2577_v33  ;;  %v861_v49 = vld [vmem:[%s4116_s4 + $0x18] sm:$0xff] }
 0x1a0   :  { %2580 = vmatpush3.bf16.msra.mxu1 %v2577_v33  ;;  %v2589_v22 = vpack.c.bf16 %v861_v49, %v860_v47  ;;  %2586 = vmatprep.subr.bf16.mxu0 %v2585_v48 }
 0x1a1   :  { %v3167_v1 = vsub.f32 %v3070_v17, %v386_v51  ;;  %v3170_v2 = vsub.f32 %v3074_v24, %v387_v52  ;;  %v454_v5 = vsel %vm323_vm1, %v416_v55, 0.0  ;;  %v457_v6 = vsel %vm323_vm1, %v417_v56, 0.0  ;;  %2582 = vmatprep.subr.bf16.mxu1 %v2581_v37  ;;  %v862_v51 = vld [vmem:[%s4116_s4 + $0x20] sm:$0xff]  ;;  %v863_v52 = vld [vmem:[%s4116_s4 + $0x28] sm:$0xff]  ;;  %2588 = vmatpush3.bf16.msra.mxu0 %v2585_v48 }
 0x1a2   :  { %v371_v7 = vpop.xlane.xlu1 %370  ;;  %455 = vadd.xlane.f32.xlu1 %v454_v5  ;;  %458 = vadd.xlane.f32.xlu0 %v457_v6  ;;  %v2593_v55 = vpack.c.bf16 %v863_v52, %v862_v51 }
 0x1a3   :  { %v388_v8 = vmul.f32 0.015625, %v371_v7  ;;  %v418_v9 = vmul.f32 %v3167_v1, %v3167_v1  ;;  %v419_v3 = vmul.f32 %v3170_v2, %v3170_v2  ;;  %2590 = vmatprep.subr.bf16.mxu0 %v2589_v22 }
 0x1a4   :  { %2584 = vmatpush3.bf16.msra.mxu1 %v2581_v37  ;;  %v3225_v37 = vld [vmem:[%s4114_s1 + $0x5] ss:$0 sm:$0xff] }
 0x1a5   :  { %v3185_v20 = vsub.f32 %v3076_v19, %v388_v8  ;;  %v460_v21 = vsel %vm323_vm1, %v418_v9, 0.0  ;;  %v463_v23 = vsel %vm323_vm1, %v419_v3, 0.0  ;;  %2592 = vmatpush3.bf16.msra.mxu0 %v2589_v22  ;;  %v3231_v22 = vld [vmem:[%s4114_s1 + $0x7] ss:$0 sm:$0xff] }
 0x1a6   :  { %461 = vadd.xlane.f32.xlu1 %v460_v21  ;;  %464 = vadd.xlane.f32.xlu0 %v463_v23 }
 0x1a7   :  { %v420_v25 = vmul.f32 %v3185_v20, %v3185_v20  ;;  %2594 = vmatprep.subr.bf16.mxu0 %v2593_v55 }
 0x1a9   :  { %v466_v34 = vsel %vm323_vm1, %v420_v25, 0.0  ;;  %2596 = vmatpush3.bf16.msra.mxu0 %v2593_v55 }
 0x1aa   :  { %467 = vadd.xlane.f32.xlu1 %v466_v34 }
 0x217   :  { %v423_v56 = vpop.xlane.xlu0 %422 }
 0x218   :  { %v469_v57 = vmul.f32 0.015625, %v423_v56 }
 0x21a   :  { %v485_v60 = vadd.f32 1e-05, %v469_v57 }
 0x21b   :  { %v426_v62 = vpop.xlane.xlu1 %425  ;;  %v429_v5 = vpop.xlane.xlu0 %428 }
 0x21c   :  { %2713 = vrsqrt.f32 %v485_v60  ;;  %v470_v6 = vmul.f32 0.015625, %v426_v62  ;;  %v471_v7 = vmul.f32 0.015625, %v429_v5 }
 0x21e   :  { %v486_v8 = vadd.f32 1e-05, %v470_v6  ;;  %v487_v9 = vadd.f32 1e-05, %v471_v7 }
 0x21f   :  { %v432_v3 = vpop.xlane.xlu1 %431  ;;  %v435_v15 = vpop.xlane.xlu0 %434 }
 0x220   :  { %2715 = vrsqrt.f32 %v486_v8  ;;  %v472_v16 = vmul.f32 0.015625, %v432_v3  ;;  %v473_v18 = vmul.f32 0.015625, %v435_v15 }
 0x221   :  { %2717 = vrsqrt.f32 %v487_v9 }
 0x222   :  { %v488_v21 = vadd.f32 1e-05, %v472_v16  ;;  %v489_v23 = vadd.f32 1e-05, %v473_v18 }
 0x223   :  { %v438_v25 = vpop.xlane.xlu1 %437  ;;  %v441_v27 = vpop.xlane.xlu0 %440 }
 0x224   :  { %2719 = vrsqrt.f32 %v488_v21  ;;  %v474_v31 = vmul.f32 0.015625, %v438_v25  ;;  %v475_v33 = vmul.f32 0.015625, %v441_v27 }
 0x225   :  { %2721 = vrsqrt.f32 %v489_v23 }
 0x226   :  { %v2714_v34 = vpop.eup %2713  ;;  %v490_v35 = vadd.f32 1e-05, %v474_v31  ;;  %v491_v36 = vadd.f32 1e-05, %v475_v33 }
 0x227   :  { %v444_v40 = vpop.xlane.xlu1 %443  ;;  %v447_v41 = vpop.xlane.xlu0 %446  ;;  %v517_v47 = vmul.f32 %v2714_v34, %v3085_v32 }
 0x228   :  { %2723 = vrsqrt.f32 %v490_v35  ;;  %v476_v48 = vmul.f32 0.015625, %v444_v40  ;;  %v477_v49 = vmul.f32 0.015625, %v447_v41 }
 0x229   :  { %2725 = vrsqrt.f32 %v491_v36  ;;  %v537_v51 = vmul.f32 %v3225_v37, %v517_v47 }
 0x22a   :  { %v2716_v52 = vpop.eup %2715  ;;  %v492_v55 = vadd.f32 1e-05, %v476_v48  ;;  %v493_v56 = vadd.f32 1e-05, %v477_v49 }
 0x22b   :  { %v2718_v57 = vpop.eup %2717  ;;  %v450_v60 = vpop.xlane.xlu1 %449  ;;  %v557_v5 = vadd.f32 %v3231_v22, %v537_v51  ;;  %v518_v32 = vmul.f32 %v2716_v52, %v3093_v39 }
 0x22c   :  { %v453_v62 = vpop.xlane.xlu0 %452  ;;  %2727 = vrsqrt.f32 %v492_v55  ;;  %v478_v6 = vmul.f32 0.015625, %v450_v60  ;;  %v519_v8 = vmul.f32 %v2718_v57, %v3090_v38 }
 0x22d   :  { %v479_v7 = vmul.f32 0.015625, %v453_v62  ;;  %2729 = vrsqrt.f32 %v493_v56  ;;  %2385 = vmatprep.mubr.msk.f32.mxu1 %vm323_vm1, %v557_v5  ;;  %v538_v9 = vmul.f32 %v3225_v37, %v518_v32 }
 0x22e   :  { %v2720_v3 = vpop.eup %2719  ;;  %v494_v15 = vadd.f32 1e-05, %v478_v6  ;;  %v539_v18 = vmul.f32 %v3225_v37, %v519_v8 }
 0x22f   :  { %v495_v16 = vadd.f32 1e-05, %v479_v7  ;;  %v2722_v21 = vpop.eup %2721  ;;  %v456_v23 = vpop.xlane.xlu1 %455  ;;  %v558_v39 = vadd.f32 %v3231_v22, %v538_v9  ;;  %v520_v27 = vmul.f32 %v2720_v3, %v3101_v50 }
 0x230   :  { %v459_v25 = vpop.xlane.xlu0 %458  ;;  %2731 = vrsqrt.f32 %v494_v15  ;;  %v480_v31 = vmul.f32 0.015625, %v456_v23  ;;  %v559_v33 = vadd.f32 %v3231_v22, %v539_v18  ;;  %v521_v35 = vmul.f32 %v2722_v21, %v3104_v42 }
 0x231   :  { %v481_v38 = vmul.f32 0.015625, %v459_v25  ;;  %2733 = vrsqrt.f32 %v495_v16  ;;  %2386 = vmatmul.mubr.msk.f32.vlgmr.msra.gmra.mrb[0].mxu1 %vm323_vm1, %v558_v39  ;;  %v540_v34 = vmul.f32 %v3225_v37, %v520_v27 }
 0x232   :  { %v2724_v36 = vpop.eup %2723  ;;  %v496_v40 = vadd.f32 1e-05, %v480_v31  ;;  %2388 = vmatprep.mubr.msk.f32.mxu1 %vm323_vm1, %v559_v33  ;;  %v541_v51 = vmul.f32 %v3225_v37, %v521_v35 }
 0x233   :  { %v497_v41 = vadd.f32 1e-05, %v481_v38  ;;  %v2726_v47 = vpop.eup %2725  ;;  %v462_v48 = vpop.xlane.xlu1 %461  ;;  %v560_v49 = vadd.f32 %v3231_v22, %v540_v34  ;;  %v522_v52 = vmul.f32 %v2724_v36, %v3113_v63 }
 0x234   :  { %v465_v50 = vpop.xlane.xlu0 %464  ;;  %2735 = vrsqrt.f32 %v496_v40  ;;  %v482_v55 = vmul.f32 0.015625, %v462_v48  ;;  %v523_v57 = vmul.f32 %v2726_v47, %v3116_v0  ;;  %v561_v42 = vadd.f32 %v3231_v22, %v541_v51 }
 0x235   :  { %v483_v56 = vmul.f32 0.015625, %v465_v50  ;;  %2737 = vrsqrt.f32 %v497_v41  ;;  %2389 = vmatmul.mubr.msk.f32.gmra.mrb[2].mxu1 %vm323_vm1, %v560_v49  ;;  %v542_v60 = vmul.f32 %v3225_v37, %v522_v52 }
 0x236   :  { %v2728_v62 = vpop.eup %2727  ;;  %v498_v5 = vadd.f32 1e-05, %v482_v55  ;;  %v543_v6 = vmul.f32 %v3225_v37, %v523_v57  ;;  %2391 = vmatprep.mubr.msk.f32.mxu1 %vm323_vm1, %v561_v42 }
 0x237   :  { %v499_v32 = vadd.f32 1e-05, %v483_v56  ;;  %v2730_v7 = vpop.eup %2729  ;;  %v468_v63 = vpop.xlane.xlu1 %467  ;;  %v562_v8 = vadd.f32 %v3231_v22, %v542_v60  ;;  %v524_v0 = vmul.f32 %v2728_v62, %v3125_v10  ;;  %v864_v60 = vld [vmem:[%s4116_s4 + $0x30] sm:$0xff] }
 0x238   :  { %2739 = vrsqrt.f32 %v498_v5  ;;  %v484_v9 = vmul.f32 0.015625, %v468_v63  ;;  %v563_v3 = vadd.f32 %v3231_v22, %v543_v6  ;;  %v525_v15 = vmul.f32 %v2730_v7, %v3128_v14  ;;  %v869_v6 = vld [vmem:[%s4116_s4 + $0x58] sm:$0xff]  ;;  %v870_v63 = vld [vmem:[%s4116_s4 + $0x60] sm:$0xff] }
 0x239   :  { %2741 = vrsqrt.f32 %v499_v32  ;;  %2392 = vmatmul.mubr.msk.f32.gmra.mrb[4].mxu1 %vm323_vm1, %v562_v8  ;;  %v544_v16 = vmul.f32 %v3225_v37, %v524_v0  ;;  %v868_v32 = vld [vmem:[%s4116_s4 + $0x50] sm:$0xff]  ;;  %v871_v8 = vld [vmem:[%s4116_s4 + $0x68] sm:$0xff] }
 0x23a   :  { %v2732_v18 = vpop.eup %2731  ;;  %v500_v21 = vadd.f32 1e-05, %v484_v9  ;;  %2394 = vmatprep.mubr.msk.f32.mxu1 %vm323_vm1, %v563_v3  ;;  %v545_v23 = vmul.f32 %v3225_v37, %v525_v15  ;;  %v2605_v7 = vpack.c.bf16 %v869_v6, %v868_v32  ;;  %v2609_v0 = vpack.c.bf16 %v871_v8, %v870_v63  ;;  %v872_v9 = vld [vmem:[%s4116_s4 + $0x70] sm:$0xff]  ;;  %v873_v3 = vld [vmem:[%s4116_s4 + $0x78] sm:$0xff] }
 0x23b   :  { %v2734_v25 = vpop.eup %2733  ;;  %v564_v10 = vadd.f32 %v3231_v22, %v544_v16  ;;  %v526_v39 = vmul.f32 %v2732_v18, %v3137_v28  ;;  %v2613_v15 = vpack.c.bf16 %v873_v3, %v872_v9  ;;  %v3329_v16 = vld [vmem:[%s4114_s1 + $0x9] ss:$0 sm:$0xff] }
 0x23c   :  { %2743 = vrsqrt.f32 %v500_v21  ;;  %v565_v27 = vadd.f32 %v3231_v22, %v545_v23  ;;  %v527_v14 = vmul.f32 %v2734_v25, %v3140_v29 }
 0x23d   :  { %2395 = vmatmul.mubr.msk.f32.gmra.mrb[6].mxu1 %vm323_vm1, %v564_v10  ;;  %v546_v31 = vmul.f32 %v3225_v37, %v526_v39 }
 0x23e   :  { %v2736_v38 = vpop.eup %2735  ;;  %2397 = vmatprep.mubr.msk.f32.mxu1 %vm323_vm1, %v565_v27  ;;  %v547_v33 = vmul.f32 %v3225_v37, %v527_v14 }
 0x23f   :  { %v2738_v34 = vpop.eup %2737  ;;  %v566_v35 = vadd.f32 %v3231_v22, %v546_v31  ;;  %v528_v36 = vmul.f32 %v2736_v38, %v3149_v44 }
 0x240   :  { %v567_v28 = vadd.f32 %v3231_v22, %v547_v33  ;;  %v529_v40 = vmul.f32 %v2738_v34, %v3152_v45 }
 0x241   :  { %2398 = vmatmul.mubr.msk.f32.gmra.mrb[8].mxu1 %vm323_vm1, %v566_v35  ;;  %v548_v29 = vmul.f32 %v3225_v37, %v528_v36 }
 0x242   :  { %v2740_v41 = vpop.eup %2739  ;;  %2400 = vmatprep.mubr.msk.f32.mxu1 %vm323_vm1, %v567_v28  ;;  %v549_v47 = vmul.f32 %v3225_v37, %v529_v40 }
 0x243   :  { %v2742_v48 = vpop.eup %2741  ;;  %v568_v50 = vadd.f32 %v3231_v22, %v548_v29  ;;  %v530_v49 = vmul.f32 %v2740_v41, %v3167_v1 }
 0x244   :  { %v569_v44 = vadd.f32 %v3231_v22, %v549_v47  ;;  %v531_v51 = vmul.f32 %v2742_v48, %v3170_v2 }
 0x245   :  { %2401 = vmatmul.mubr.msk.f32.gmra.mrb[10].mxu1 %vm323_vm1, %v568_v50  ;;  %v550_v45 = vmul.f32 %v3225_v37, %v530_v49 }
 0x246   :  { %v2744_v52 = vpop.eup %2743  ;;  %2403 = vmatprep.mubr.msk.f32.mxu1 %vm323_vm1, %v569_v44  ;;  %v551_v55 = vmul.f32 %v3225_v37, %v531_v51 }
 0x247   :  { %v570_v56 = vadd.f32 %v3231_v22, %v550_v45  ;;  %v532_v57 = vmul.f32 %v2744_v52, %v3185_v20  ;;  %v865_v20 = vld [vmem:[%s4116_s4 + $0x38] sm:$0xff] }
 0x248   :  { %v571_v42 = vadd.f32 %v3231_v22, %v551_v55  ;;  %v2597_v62 = vpack.c.bf16 %v865_v20, %v864_v60 }
 0x249   :  { %2404 = vmatmul.mubr.msk.f32.gmra.mrb[12].mxu1 %vm323_vm1, %v570_v56  ;;  %v552_v1 = vmul.f32 %v3225_v37, %v532_v57  ;;  %v866_v37 = vld [vmem:[%s4116_s4 + $0x40] sm:$0xff] }
 0x24a   :  { %2406 = vmatprep.mubr.msk.f32.mxu1 %vm323_vm1, %v571_v42  ;;  %2598 = vmatprep.subr.bf16.mxu0 %v2597_v62 }
 0x24b   :  { %v572_v2 = vadd.f32 %v3231_v22, %v552_v1  ;;  %2600 = vmatpush3.bf16.msra.mxu0 %v2597_v62  ;;  %v867_v22 = vld [vmem:[%s4116_s4 + $0x48] sm:$0xff] }
 0x24c   :  { %v2601_v5 = vpack.c.bf16 %v867_v22, %v866_v37 }
 0x24d   :  { %2407 = vmatmul.mubr.msk.f32.gmra.mrb[14].mxu1 %vm323_vm1, %v572_v2 }
 0x24e   :  { %2602 = vmatprep.subr.bf16.mxu0 %v2601_v5 }
 0x24f   :  { %2604 = vmatpush3.bf16.msra.mxu0 %v2601_v5 }
 0x250   :  { %2606 = vmatprep.subr.bf16.mxu0 %v2605_v7 }
 0x253   :  { %2608 = vmatpush3.bf16.msra.mxu0 %v2605_v7 }
 0x254   :  { %2610 = vmatprep.subr.bf16.mxu0 %v2609_v0 }
 0x257   :  { %2612 = vmatpush3.bf16.msra.mxu0 %v2609_v0 }
 0x258   :  { %2614 = vmatprep.subr.bf16.mxu0 %v2613_v15 }
 0x25b   :  { %2616 = vmatpush3.bf16.msra.mxu0 %v2613_v15 }
 0x304   :  { %v2387_v18 = vpop.f32.mrb[0].mxu1 }
 0x305   :  { %v705_v21 = vadd.f32 %v2387_v18, %v3329_v16  ;;  %v699_v23 = vpop.f32.mrb[1].mxu1 }
 0x306   :  { %v700_v25 = vadd.f32 %v3329_v16, %v699_v23 }
 0x307   :  { %v795_v10 = vmul.f32 0.70710677, %v705_v21  ;;  %v779_v60 = vmul.f32 0.5, %v705_v21 }
 0x308   :  { %v794_v39 = vmul.f32 0.70710677, %v700_v25  ;;  %v2390_v27 = vpop.f32.mrb[2].mxu1  ;;  %v778_v57 = vmul.f32 0.5, %v700_v25 }
 0x309   :  { %2745 = verf.f32 %v795_v10  ;;  %v715_v14 = vadd.f32 %v2390_v27, %v3329_v16  ;;  %v709_v31 = vpop.f32.mrb[3].mxu1 }
 0x30a   :  { %2747 = verf.f32 %v794_v39  ;;  %v710_v38 = vadd.f32 %v3329_v16, %v709_v31 }
 0x30b   :  { %v797_v33 = vmul.f32 0.70710677, %v715_v14  ;;  %v781_v15 = vmul.f32 0.5, %v715_v14 }
 0x30c   :  { %v796_v34 = vmul.f32 0.70710677, %v710_v38  ;;  %v2393_v35 = vpop.f32.mrb[4].mxu1  ;;  %v780_v8 = vmul.f32 0.5, %v710_v38 }
 0x30d   :  { %2749 = verf.f32 %v797_v33  ;;  %v725_v36 = vadd.f32 %v2393_v35, %v3329_v16  ;;  %v719_v28 = vpop.f32.mrb[5].mxu1 }
 0x30e   :  { %2751 = verf.f32 %v796_v34  ;;  %v720_v40 = vadd.f32 %v3329_v16, %v719_v28 }
 0x30f   :  { %v799_v29 = vmul.f32 0.70710677, %v725_v36  ;;  %v783_v14 = vmul.f32 0.5, %v725_v36 }
 0x310   :  { %v798_v41 = vmul.f32 0.70710677, %v720_v40  ;;  %v2396_v47 = vpop.f32.mrb[6].mxu1  ;;  %v782_v33 = vmul.f32 0.5, %v720_v40 }
 0x311   :  { %2753 = verf.f32 %v799_v29  ;;  %v3338_v48 = vadd.f32 %v2396_v47, %v3329_v16  ;;  %v729_v50 = vpop.f32.mrb[7].mxu1 }
 0x312   :  { %2755 = verf.f32 %v798_v41  ;;  %v730_v49 = vadd.f32 %v3329_v16, %v729_v50 }
 0x313   :  { %v2746_v44 = vpop.eup %2745  ;;  %v801_v51 = vmul.f32 0.70710677, %v3338_v48  ;;  %v785_v36 = vmul.f32 0.5, %v3338_v48 }
 0x314   :  { %v2748_v45 = vpop.eup %2747  ;;  %v827_v52 = vadd.f32 1.0, %v2746_v44  ;;  %v800_v55 = vmul.f32 0.70710677, %v730_v49  ;;  %v2399_v56 = vpop.f32.mrb[8].mxu1  ;;  %v784_v40 = vmul.f32 0.5, %v730_v49 }
 0x315   :  { %v826_v42 = vadd.f32 1.0, %v2748_v45  ;;  %2757 = verf.f32 %v801_v51  ;;  %v3343_v1 = vadd.f32 %v2399_v56, %v3329_v16  ;;  %v739_v2 = vpop.f32.mrb[9].mxu1 }
 0x316   :  { %2759 = verf.f32 %v800_v55  ;;  %v740_v20 = vadd.f32 %v3329_v16, %v739_v2  ;;  %v843_v32 = vmul.f32 %v827_v52, %v779_v60 }
 0x317   :  { %v2750_v62 = vpop.eup %2749  ;;  %v803_v37 = vmul.f32 0.70710677, %v3343_v1  ;;  %v842_v22 = vmul.f32 %v826_v42, %v778_v57 }
 0x318   :  { %v2752_v5 = vpop.eup %2751  ;;  %v829_v6 = vadd.f32 1.0, %v2750_v62  ;;  %v802_v7 = vmul.f32 0.70710677, %v740_v20  ;;  %v2402_v63 = vpop.f32.mrb[10].mxu1  ;;  %v786_v49 = vmul.f32 0.5, %v740_v20 }
 0x319   :  { %v828_v0 = vadd.f32 1.0, %v2752_v5  ;;  %2761 = verf.f32 %v803_v37  ;;  %v3348_v9 = vadd.f32 %v2402_v63, %v3329_v16  ;;  %v749_v3 = vpop.f32.mrb[11].mxu1  ;;  %2441 = vmatprep.mubr.f32.mxu0 %v842_v22  ;;  %v787_v63 = vmul.f32 0.5, %v3343_v1 }
 0x31a   :  { %2763 = verf.f32 %v802_v7  ;;  %v750_v18 = vadd.f32 %v3329_v16, %v749_v3  ;;  %2442 = vmatmul.mubr.f32.vlgmr.msra.gmra.mrb[16].mxu0 %v843_v32  ;;  %v845_v38 = vmul.f32 %v829_v6, %v781_v15 }
 0x31b   :  { %v2754_v21 = vpop.eup %2753  ;;  %v805_v23 = vmul.f32 0.70710677, %v3348_v9  ;;  %v844_v25 = vmul.f32 %v828_v0, %v780_v8 }
 0x31c   :  { %v2756_v10 = vpop.eup %2755  ;;  %v831_v39 = vadd.f32 1.0, %v2754_v21  ;;  %v804_v27 = vmul.f32 0.70710677, %v750_v18  ;;  %v2405_v31 = vpop.f32.mrb[12].mxu1  ;;  %v788_v15 = vmul.f32 0.5, %v750_v18 }
 0x31d   :  { %v830_v34 = vadd.f32 1.0, %v2756_v10  ;;  %2765 = verf.f32 %v805_v23  ;;  %v765_v35 = vadd.f32 %v2405_v31, %v3329_v16  ;;  %v759_v28 = vpop.f32.mrb[13].mxu1  ;;  %2444 = vmatprep.mubr.f32.mxu0 %v844_v25  ;;  %v789_v23 = vmul.f32 0.5, %v3348_v9 }
 0x31e   :  { %2767 = verf.f32 %v804_v27  ;;  %v760_v29 = vadd.f32 %v3329_v16, %v759_v28  ;;  %2445 = vmatmul.mubr.f32.gmra.mrb[18].mxu0 %v845_v38  ;;  %v847_v55 = vmul.f32 %v831_v39, %v783_v14 }
 0x31f   :  { %v2758_v41 = vpop.eup %2757  ;;  %v807_v47 = vmul.f32 0.70710677, %v765_v35  ;;  %v846_v50 = vmul.f32 %v830_v34, %v782_v33  ;;  %v791_v38 = vmul.f32 0.5, %v765_v35 }
 0x320   :  { %v2760_v44 = vpop.eup %2759  ;;  %v833_v51 = vadd.f32 1.0, %v2758_v41  ;;  %v806_v45 = vmul.f32 0.70710677, %v760_v29  ;;  %v2408_v52 = vpop.f32.mrb[14].mxu1  ;;  %v790_v31 = vmul.f32 0.5, %v760_v29 }
 0x321   :  { %v832_v56 = vadd.f32 1.0, %v2760_v44  ;;  %2769 = verf.f32 %v807_v47  ;;  %v775_v57 = vadd.f32 %v2408_v52, %v3329_v16  ;;  %v769_v42 = vpop.f32.mrb[15].mxu1  ;;  %2447 = vmatprep.mubr.f32.mxu0 %v846_v50  ;;  %v3362_v29 = vld [vmem:[%s4114_s1 + $0xb] ss:$0 sm:$0xff] }
 0x322   :  { %2771 = verf.f32 %v806_v45  ;;  %v770_v2 = vadd.f32 %v3329_v16, %v769_v42  ;;  %2448 = vmatmul.mubr.f32.gmra.mrb[20].mxu0 %v847_v55  ;;  %v849_v6 = vmul.f32 %v833_v51, %v785_v36 }
 0x323   :  { %v2762_v60 = vpop.eup %2761  ;;  %v809_v62 = vmul.f32 0.70710677, %v775_v57  ;;  %v848_v37 = vmul.f32 %v832_v56, %v784_v40  ;;  %v793_v9 = vmul.f32 0.5, %v775_v57 }
 0x324   :  { %v2764_v22 = vpop.eup %2763  ;;  %v835_v5 = vadd.f32 1.0, %v2762_v60  ;;  %v808_v32 = vmul.f32 0.70710677, %v770_v2  ;;  %v792_v41 = vmul.f32 0.5, %v770_v2 }
 0x325   :  { %v834_v7 = vadd.f32 1.0, %v2764_v22  ;;  %2773 = verf.f32 %v809_v62  ;;  %2450 = vmatprep.mubr.f32.mxu0 %v848_v37 }
 0x326   :  { %2775 = verf.f32 %v808_v32  ;;  %2451 = vmatmul.mubr.f32.gmra.mrb[22].mxu0 %v849_v6  ;;  %v851_v3 = vmul.f32 %v835_v5, %v787_v63 }
 0x327   :  { %v2766_v48 = vpop.eup %2765  ;;  %v850_v8 = vmul.f32 %v834_v7, %v786_v49 }
 0x328   :  { %v2768_v0 = vpop.eup %2767  ;;  %v837_v16 = vadd.f32 1.0, %v2766_v48 }
 0x329   :  { %v836_v21 = vadd.f32 1.0, %v2768_v0  ;;  %2453 = vmatprep.mubr.f32.mxu0 %v850_v8 }
 0x32a   :  { %2454 = vmatmul.mubr.f32.gmra.mrb[24].mxu0 %v851_v3  ;;  %v853_v27 = vmul.f32 %v837_v16, %v789_v23 }
 0x32b   :  { %v2770_v25 = vpop.eup %2769  ;;  %v852_v20 = vmul.f32 %v836_v21, %v788_v15 }
 0x32c   :  { %v2772_v10 = vpop.eup %2771  ;;  %v839_v39 = vadd.f32 1.0, %v2770_v25 }
 0x32d   :  { %v838_v1 = vadd.f32 1.0, %v2772_v10  ;;  %2456 = vmatprep.mubr.f32.mxu0 %v852_v20 }
 0x32e   :  { %2457 = vmatmul.mubr.f32.gmra.mrb[26].mxu0 %v853_v27  ;;  %v855_v18 = vmul.f32 %v839_v39, %v791_v38 }
 0x32f   :  { %v2774_v33 = vpop.eup %2773  ;;  %v854_v34 = vmul.f32 %v838_v1, %v790_v31 }
 0x330   :  { %v2776_v28 = vpop.eup %2775  ;;  %v841_v14 = vadd.f32 1.0, %v2774_v33 }
 0x331   :  { %v840_v47 = vadd.f32 1.0, %v2776_v28  ;;  %2459 = vmatprep.mubr.f32.mxu0 %v854_v34 }
 0x332   :  { %2460 = vmatmul.mubr.f32.gmra.mrb[28].mxu0 %v855_v18  ;;  %v857_v44 = vmul.f32 %v841_v14, %v793_v9 }
 0x333   :  { %v856_v50 = vmul.f32 %v840_v47, %v792_v41 }
 0x335   :  { %2462 = vmatprep.mubr.f32.mxu0 %v856_v50 }
 0x336   :  { %2463 = vmatmul.mubr.f32.gmra.mrb[30].mxu0 %v857_v44 }
 0x3ed   :  { %v2443_v35 = vpop.f32.mrb[16].mxu0 }
 0x3ee   :  { %v950_v51 = vadd.f32 %v2443_v35, %v3362_v29  ;;  %v944_v45 = vpop.f32.mrb[17].mxu0 }
 0x3ef   :  { %v945_v52 = vadd.f32 %v3362_v29, %v944_v45 }
 0x3f0   :  { %v3367_v55 = vadd.f32 %v950_v51, %v3004_v61 }
 0x3f1   :  { %v3370_v40 = vadd.f32 %v945_v52, %v3002_v59  ;;  %v2446_v56 = vpop.f32.mrb[18].mxu0 }
 0x3f2   :  { %v960_v57 = vadd.f32 %v2446_v56, %v3362_v29  ;;  %v954_v42 = vpop.f32.mrb[19].mxu0  ;;  %v1046_v36 = vsel %vm323_vm1, %v3367_v55, 0.0  ;;  %v2162_v56 = vld [vmem:[%s4115_s3 + $0x58] sm:$0xff] }
 0x3f3   :  { %v955_v2 = vadd.f32 %v3362_v29, %v954_v42  ;;  %1047 = vadd.xlane.f32.xlu1 %v1046_v36  ;;  %v1043_v60 = vsel %vm323_vm1, %v3370_v40, 0.0 }
 0x3f4   :  { %v3379_v62 = vadd.f32 %v960_v57, %v3016_v13  ;;  %1044 = vadd.xlane.f32.xlu0 %v1043_v60 }
 0x3f5   :  { %v3382_v59 = vadd.f32 %v955_v2, %v3014_v11  ;;  %v2449_v61 = vpop.f32.mrb[20].mxu0 }
 0x3f6   :  { %v970_v37 = vadd.f32 %v2449_v61, %v3362_v29  ;;  %v964_v22 = vpop.f32.mrb[21].mxu0  ;;  %v1052_v5 = vsel %vm323_vm1, %v3379_v62, 0.0 }
 0x3f7   :  { %v965_v32 = vadd.f32 %v3362_v29, %v964_v22  ;;  %1053 = vadd.xlane.f32.xlu1 %v1052_v5  ;;  %v1049_v6 = vsel %vm323_vm1, %v3382_v59, 0.0 }
 0x3f8   :  { %v3391_v13 = vadd.f32 %v970_v37, %v3029_v30  ;;  %1050 = vadd.xlane.f32.xlu0 %v1049_v6 }
 0x3f9   :  { %v3394_v11 = vadd.f32 %v965_v32, %v3026_v26  ;;  %v2452_v49 = vpop.f32.mrb[22].mxu0 }
 0x3fa   :  { %v980_v7 = vadd.f32 %v2452_v49, %v3362_v29  ;;  %v974_v63 = vpop.f32.mrb[23].mxu0  ;;  %v1058_v48 = vsel %vm323_vm1, %v3391_v13, 0.0 }
 0x3fb   :  { %v975_v8 = vadd.f32 %v3362_v29, %v974_v63  ;;  %1059 = vadd.xlane.f32.xlu1 %v1058_v48  ;;  %v1055_v0 = vsel %vm323_vm1, %v3394_v11, 0.0 }
 0x3fc   :  { %v3403_v30 = vadd.f32 %v980_v7, %v3040_v46  ;;  %1056 = vadd.xlane.f32.xlu0 %v1055_v0 }
 0x3fd   :  { %v3406_v26 = vadd.f32 %v975_v8, %v3038_v43  ;;  %v2455_v16 = vpop.f32.mrb[24].mxu0 }
 0x3fe   :  { %v990_v3 = vadd.f32 %v2455_v16, %v3362_v29  ;;  %v984_v15 = vpop.f32.mrb[25].mxu0  ;;  %v1064_v21 = vsel %vm323_vm1, %v3403_v30, 0.0 }
 0x3ff   :  { %v985_v23 = vadd.f32 %v3362_v29, %v984_v15  ;;  %1065 = vadd.xlane.f32.xlu1 %v1064_v21  ;;  %v1061_v25 = vsel %vm323_vm1, %v3406_v26, 0.0 }
 0x400   :  { %v3415_v46 = vadd.f32 %v990_v3, %v3050_v58  ;;  %1062 = vadd.xlane.f32.xlu0 %v1061_v25 }
 0x401   :  { %v3418_v43 = vadd.f32 %v985_v23, %v3048_v54  ;;  %v2458_v20 = vpop.f32.mrb[26].mxu0 }
 0x402   :  { %v1000_v10 = vadd.f32 %v2458_v20, %v3362_v29  ;;  %v994_v39 = vpop.f32.mrb[27].mxu0  ;;  %v1070_v27 = vsel %vm323_vm1, %v3415_v46, 0.0 }
 0x403   :  { %v995_v31 = vadd.f32 %v3362_v29, %v994_v39  ;;  %1071 = vadd.xlane.f32.xlu1 %v1070_v27  ;;  %v1067_v1 = vsel %vm323_vm1, %v3418_v43, 0.0 }
 0x404   :  { %v3427_v58 = vadd.f32 %v1000_v10, %v3059_v4  ;;  %1068 = vadd.xlane.f32.xlu0 %v1067_v1 }
 0x405   :  { %v3430_v54 = vadd.f32 %v995_v31, %v3057_v53  ;;  %v2461_v38 = vpop.f32.mrb[28].mxu0 }
 0x406   :  { %v1010_v33 = vadd.f32 %v2461_v38, %v3362_v29  ;;  %v1004_v34 = vpop.f32.mrb[29].mxu0  ;;  %v1076_v28 = vsel %vm323_vm1, %v3427_v58, 0.0 }
 0x407   :  { %v1005_v14 = vadd.f32 %v3362_v29, %v1004_v34  ;;  %1077 = vadd.xlane.f32.xlu1 %v1076_v28  ;;  %v1073_v18 = vsel %vm323_vm1, %v3430_v54, 0.0 }
 0x408   :  { %v3439_v4 = vadd.f32 %v1010_v33, %v3070_v17  ;;  %1074 = vadd.xlane.f32.xlu0 %v1073_v18 }
 0x409   :  { %v3442_v53 = vadd.f32 %v1005_v14, %v3066_v12  ;;  %v2464_v41 = vpop.f32.mrb[30].mxu0 }
 0x40a   :  { %v1020_v47 = vadd.f32 %v2464_v41, %v3362_v29  ;;  %v1014_v9 = vpop.f32.mrb[31].mxu0  ;;  %v1082_v50 = vsel %vm323_vm1, %v3439_v4, 0.0 }
 0x40b   :  { %v1015_v44 = vadd.f32 %v3362_v29, %v1014_v9  ;;  %1083 = vadd.xlane.f32.xlu1 %v1082_v50  ;;  %v1079_v35 = vsel %vm323_vm1, %v3442_v53, 0.0  ;;  %v2159_v29 = vld [vmem:[%s4115_s3 + $0x40] sm:$0xff] }
 0x40c   :  { %v3451_v17 = vadd.f32 %v1020_v47, %v3076_v19  ;;  %1080 = vadd.xlane.f32.xlu0 %v1079_v35  ;;  %v2160_v19 = vld [vmem:[%s4115_s3 + $0x48] sm:$0xff] }
 0x40d   :  { %v3454_v12 = vadd.f32 %v1015_v44, %v3074_v24  ;;  %v2161_v24 = vld [vmem:[%s4115_s3 + $0x50] sm:$0xff]  ;;  %v2617_v52 = vpack.c.bf16 %v2160_v19, %v2159_v29 }
 0x40e   :  { %v1088_v51 = vsel %vm323_vm1, %v3451_v17, 0.0  ;;  %v2621_v57 = vpack.c.bf16 %v2162_v56, %v2161_v24 }
 0x40f   :  { %1089 = vadd.xlane.f32.xlu1 %v1088_v51  ;;  %v1085_v45 = vsel %vm323_vm1, %v3454_v12, 0.0  ;;  %2618 = vmatprep.subr.bf16.mxu1 %v2617_v52 }
 0x410   :  { %1086 = vadd.xlane.f32.xlu0 %v1085_v45  ;;  %2620 = vmatpush3.bf16.msra.mxu1 %v2617_v52 }
 0x411   :  { %2622 = vmatprep.subr.bf16.mxu1 %v2621_v57 }
 0x414   :  { %2624 = vmatpush3.bf16.msra.mxu1 %v2621_v57 }
 0x480   :  { %v1048_v42 = vpop.xlane.xlu1 %1047 }
 0x481   :  { %v1092_v36 = vmul.f32 0.015625, %v1048_v42  ;;  %v1045_v2 = vpop.xlane.xlu0 %1044 }
 0x482   :  { %v1091_v60 = vmul.f32 0.015625, %v1045_v2 }
 0x483   :  { %v3473_v61 = vsub.f32 %v3367_v55, %v1092_v36 }
 0x484   :  { %v3476_v37 = vsub.f32 %v3370_v40, %v1091_v60  ;;  %v1054_v22 = vpop.xlane.xlu1 %1053 }
 0x485   :  { %v1094_v5 = vmul.f32 0.015625, %v1054_v22  ;;  %v1051_v32 = vpop.xlane.xlu0 %1050  ;;  %v1124_v6 = vmul.f32 %v3473_v61, %v3473_v61 }
 0x486   :  { %v1093_v49 = vmul.f32 0.015625, %v1051_v32  ;;  %v1123_v7 = vmul.f32 %v3476_v37, %v3476_v37 }
 0x487   :  { %v3483_v63 = vsub.f32 %v3379_v62, %v1094_v5  ;;  %v1142_v48 = vsel %vm323_vm1, %v1124_v6, 0.0 }
 0x488   :  { %v3487_v8 = vsub.f32 %v3382_v59, %v1093_v49  ;;  %v1060_v0 = vpop.xlane.xlu1 %1059  ;;  %1143 = vadd.xlane.f32.xlu1 %v1142_v48  ;;  %v1139_v16 = vsel %vm323_vm1, %v1123_v7, 0.0 }
 0x489   :  { %v1096_v3 = vmul.f32 0.015625, %v1060_v0  ;;  %1140 = vadd.xlane.f32.xlu0 %v1139_v16  ;;  %v1057_v15 = vpop.xlane.xlu0 %1056  ;;  %v1126_v21 = vmul.f32 %v3483_v63, %v3483_v63 }
 0x48a   :  { %v1095_v23 = vmul.f32 0.015625, %v1057_v15  ;;  %v1125_v25 = vmul.f32 %v3487_v8, %v3487_v8 }
 0x48b   :  { %v3495_v20 = vsub.f32 %v3391_v13, %v1096_v3  ;;  %v1148_v10 = vsel %vm323_vm1, %v1126_v21, 0.0 }
 0x48c   :  { %v3499_v39 = vsub.f32 %v3394_v11, %v1095_v23  ;;  %v1066_v27 = vpop.xlane.xlu1 %1065  ;;  %1149 = vadd.xlane.f32.xlu1 %v1148_v10  ;;  %v1145_v31 = vsel %vm323_vm1, %v1125_v25, 0.0 }
 0x48d   :  { %v1098_v1 = vmul.f32 0.015625, %v1066_v27  ;;  %1146 = vadd.xlane.f32.xlu0 %v1145_v31  ;;  %v1063_v38 = vpop.xlane.xlu0 %1062  ;;  %v1128_v33 = vmul.f32 %v3495_v20, %v3495_v20 }
 0x48e   :  { %v1097_v34 = vmul.f32 0.015625, %v1063_v38  ;;  %v1127_v28 = vmul.f32 %v3499_v39, %v3499_v39 }
 0x48f   :  { %v3507_v14 = vsub.f32 %v3403_v30, %v1098_v1  ;;  %v1154_v18 = vsel %vm323_vm1, %v1128_v33, 0.0 }
 0x490   :  { %v3511_v41 = vsub.f32 %v3406_v26, %v1097_v34  ;;  %v1072_v47 = vpop.xlane.xlu1 %1071  ;;  %1155 = vadd.xlane.f32.xlu1 %v1154_v18  ;;  %v1151_v9 = vsel %vm323_vm1, %v1127_v28, 0.0 }
 0x491   :  { %v1100_v50 = vmul.f32 0.015625, %v1072_v47  ;;  %1152 = vadd.xlane.f32.xlu0 %v1151_v9  ;;  %v1069_v44 = vpop.xlane.xlu0 %1068  ;;  %v1130_v35 = vmul.f32 %v3507_v14, %v3507_v14 }
 0x492   :  { %v1099_v51 = vmul.f32 0.015625, %v1069_v44  ;;  %v1129_v45 = vmul.f32 %v3511_v41, %v3511_v41 }
 0x493   :  { %v3519_v29 = vsub.f32 %v3415_v46, %v1100_v50  ;;  %v1160_v19 = vsel %vm323_vm1, %v1130_v35, 0.0 }
 0x494   :  { %v3523_v24 = vsub.f32 %v3418_v43, %v1099_v51  ;;  %v1078_v52 = vpop.xlane.xlu1 %1077  ;;  %1161 = vadd.xlane.f32.xlu1 %v1160_v19  ;;  %v1157_v56 = vsel %vm323_vm1, %v1129_v45, 0.0  ;;  %v2163_v51 = vld [vmem:[%s4115_s3 + $0x60] sm:$0xff]  ;;  %v2164_v45 = vld [vmem:[%s4115_s3 + $0x68] sm:$0xff] }
 0x495   :  { %v1102_v57 = vmul.f32 0.015625, %v1078_v52  ;;  %1158 = vadd.xlane.f32.xlu0 %v1157_v56  ;;  %v1075_v42 = vpop.xlane.xlu0 %1074  ;;  %v1132_v36 = vmul.f32 %v3519_v29, %v3519_v29  ;;  %v2625_v19 = vpack.c.bf16 %v2164_v45, %v2163_v51  ;;  %v2165_v52 = vld [vmem:[%s4115_s3 + $0x70] sm:$0xff]  ;;  %v2166_v56 = vld [vmem:[%s4115_s3 + $0x78] sm:$0xff] }
 0x496   :  { %v1101_v2 = vmul.f32 0.015625, %v1075_v42  ;;  %v1131_v60 = vmul.f32 %v3523_v24, %v3523_v24  ;;  %v2184_v42 = vld [vmem:[%s4116_s4 + $0x80] sm:$0xff] }
 0x497   :  { %v3531_v22 = vsub.f32 %v3427_v58, %v1102_v57  ;;  %v1166_v5 = vsel %vm323_vm1, %v1132_v36, 0.0  ;;  %2626 = vmatprep.subr.bf16.mxu1 %v2625_v19  ;;  %v2629_v57 = vpack.c.bf16 %v2166_v56, %v2165_v52  ;;  %v2185_v36 = vld [vmem:[%s4116_s4 + $0x88] sm:$0xff] }
 0x498   :  { %v3535_v32 = vsub.f32 %v3430_v54, %v1101_v2  ;;  %v1084_v6 = vpop.xlane.xlu1 %1083  ;;  %1167 = vadd.xlane.f32.xlu1 %v1166_v5  ;;  %v1163_v49 = vsel %vm323_vm1, %v1131_v60, 0.0  ;;  %2628 = vmatpush3.bf16.msra.mxu1 %v2625_v19  ;;  %v2186_v2 = vld [vmem:[%s4116_s4 + $0x90] sm:$0xff]  ;;  %v3589_v60 = vpack.c.bf16 %v2185_v36, %v2184_v42  ;;  %v2187_v5 = vld [vmem:[%s4116_s4 + $0x98] sm:$0xff]  ;;  %v3614_v42 = vld [vmem:[%s4114_s1 + $0x6] ss:$0 sm:$0xff] }
 0x499   :  { %v1104_v7 = vmul.f32 0.015625, %v1084_v6  ;;  %1164 = vadd.xlane.f32.xlu0 %v1163_v49  ;;  %v1081_v48 = vpop.xlane.xlu0 %1080  ;;  %v1134_v0 = vmul.f32 %v3531_v22, %v3531_v22  ;;  %2630 = vmatprep.subr.bf16.mxu1 %v2629_v57  ;;  %v3594_v6 = vpack.c.bf16 %v2187_v5, %v2186_v2  ;;  %v2188_v49 = vld [vmem:[%s4116_s4 + $0xa0] sm:$0xff] }
 0x49a   :  { %v1103_v16 = vmul.f32 0.015625, %v1081_v48  ;;  %v1133_v3 = vmul.f32 %v3535_v32, %v3535_v32  ;;  %2634 = vmatprep.subr.bf16.mxu0 %v3589_v60 }
 0x49b   :  { %v3543_v15 = vsub.f32 %v3439_v4, %v1104_v7  ;;  %v1172_v21 = vsel %vm323_vm1, %v1134_v0, 0.0  ;;  %v2189_v7 = vld [vmem:[%s4116_s4 + $0xa8] sm:$0xff]  ;;  %2636 = vmatpush3.bf16.msra.mxu0 %v3589_v60 }
 0x49c   :  { %v3547_v23 = vsub.f32 %v3442_v53, %v1103_v16  ;;  %1173 = vadd.xlane.f32.xlu1 %v1172_v21  ;;  %v1090_v25 = vpop.xlane.xlu1 %1089  ;;  %v1169_v10 = vsel %vm323_vm1, %v1133_v3, 0.0  ;;  %2632 = vmatpush3.bf16.msra.mxu1 %v2629_v57  ;;  %v3606_v48 = vpack.c.bf16 %v2189_v7, %v2188_v49 }
 0x49d   :  { %v1106_v27 = vmul.f32 0.015625, %v1090_v25  ;;  %1170 = vadd.xlane.f32.xlu0 %v1169_v10  ;;  %v1087_v31 = vpop.xlane.xlu0 %1086  ;;  %v1136_v1 = vmul.f32 %v3543_v15, %v3543_v15  ;;  %2665 = vmatprep.subr.bf16.mxu1 %v3589_v60 }
 0x49e   :  { %v1105_v38 = vmul.f32 0.015625, %v1087_v31  ;;  %v1135_v33 = vmul.f32 %v3547_v23, %v3547_v23  ;;  %2638 = vmatprep.subr.bf16.mxu0 %v3594_v6 }
 0x49f   :  { %v3555_v34 = vsub.f32 %v3451_v17, %v1106_v27  ;;  %v1178_v28 = vsel %vm323_vm1, %v1136_v1, 0.0  ;;  %2640 = vmatpush3.bf16.msra.mxu0 %v3594_v6 }
 0x4a0   :  { %v3559_v18 = vsub.f32 %v3454_v12, %v1105_v38  ;;  %1179 = vadd.xlane.f32.xlu1 %v1178_v28  ;;  %v1175_v47 = vsel %vm323_vm1, %v1135_v33, 0.0  ;;  %2642 = vmatprep.subr.bf16.mxu0 %v3606_v48 }
 0x4a1   :  { %1176 = vadd.xlane.f32.xlu0 %v1175_v47  ;;  %v1138_v9 = vmul.f32 %v3555_v34, %v3555_v34 }
 0x4a2   :  { %v1137_v50 = vmul.f32 %v3559_v18, %v3559_v18 }
 0x4a3   :  { %v1184_v44 = vsel %vm323_vm1, %v1138_v9, 0.0  ;;  %2644 = vmatpush3.bf16.msra.mxu0 %v3606_v48 }
 0x4a4   :  { %1185 = vadd.xlane.f32.xlu1 %v1184_v44  ;;  %v1181_v35 = vsel %vm323_vm1, %v1137_v50, 0.0 }
 0x4a5   :  { %1182 = vadd.xlane.f32.xlu0 %v1181_v35 }
 0x515   :  { %v1144_v0 = vpop.xlane.xlu1 %1143 }
 0x516   :  { %v1188_v16 = vmul.f32 0.015625, %v1144_v0  ;;  %v1141_v3 = vpop.xlane.xlu0 %1140 }
 0x517   :  { %v1187_v21 = vmul.f32 0.015625, %v1141_v3 }
 0x518   :  { %v1204_v25 = vadd.f32 1e-05, %v1188_v16 }
 0x519   :  { %v1203_v10 = vadd.f32 1e-05, %v1187_v21  ;;  %v1150_v27 = vpop.xlane.xlu1 %1149  ;;  %v3621_v21 = vld [vmem:[%s4114_s1 + $0x8] ss:$0 sm:$0xff] }
 0x51a   :  { %2777 = vrsqrt.f32 %v1204_v25  ;;  %v1190_v31 = vmul.f32 0.015625, %v1150_v27  ;;  %v1147_v1 = vpop.xlane.xlu0 %1146 }
 0x51b   :  { %2779 = vrsqrt.f32 %v1203_v10  ;;  %v1189_v38 = vmul.f32 0.015625, %v1147_v1 }
 0x51c   :  { %v1206_v33 = vadd.f32 1e-05, %v1190_v31 }
 0x51d   :  { %v1205_v28 = vadd.f32 1e-05, %v1189_v38  ;;  %v1156_v47 = vpop.xlane.xlu1 %1155 }
 0x51e   :  { %2781 = vrsqrt.f32 %v1206_v33  ;;  %v1192_v9 = vmul.f32 0.015625, %v1156_v47  ;;  %v1153_v50 = vpop.xlane.xlu0 %1152 }
 0x51f   :  { %2783 = vrsqrt.f32 %v1205_v28  ;;  %v1191_v44 = vmul.f32 0.015625, %v1153_v50 }
 0x520   :  { %v1208_v35 = vadd.f32 1e-05, %v1192_v9 }
 0x521   :  { %v1207_v51 = vadd.f32 1e-05, %v1191_v44  ;;  %v1162_v45 = vpop.xlane.xlu1 %1161 }
 0x522   :  { %2785 = vrsqrt.f32 %v1208_v35  ;;  %v1194_v19 = vmul.f32 0.015625, %v1162_v45  ;;  %v1159_v52 = vpop.xlane.xlu0 %1158 }
 0x523   :  { %2787 = vrsqrt.f32 %v1207_v51  ;;  %v1193_v56 = vmul.f32 0.015625, %v1159_v52 }
 0x524   :  { %v2778_v57 = vpop.eup %2777  ;;  %v1210_v36 = vadd.f32 1e-05, %v1194_v19 }
 0x525   :  { %v2780_v2 = vpop.eup %2779  ;;  %v1236_v5 = vmul.f32 %v2778_v57, %v3473_v61  ;;  %v1209_v49 = vadd.f32 1e-05, %v1193_v56  ;;  %v1168_v7 = vpop.xlane.xlu1 %1167 }
 0x526   :  { %2789 = vrsqrt.f32 %v1210_v36  ;;  %v1196_v0 = vmul.f32 0.015625, %v1168_v7  ;;  %v1165_v16 = vpop.xlane.xlu0 %1164  ;;  %v1235_v3 = vmul.f32 %v2780_v2, %v3476_v37 }
 0x527   :  { %v1256_v25 = vmul.f32 %v3614_v42, %v1236_v5  ;;  %2791 = vrsqrt.f32 %v1209_v49  ;;  %v1195_v10 = vmul.f32 0.015625, %v1165_v16 }
 0x528   :  { %v2782_v27 = vpop.eup %2781  ;;  %v1212_v31 = vadd.f32 1e-05, %v1196_v0  ;;  %v1255_v61 = vmul.f32 %v3614_v42, %v1235_v3 }
 0x529   :  { %v2784_v1 = vpop.eup %2783  ;;  %v1211_v38 = vadd.f32 1e-05, %v1195_v10  ;;  %v1174_v33 = vpop.xlane.xlu1 %1173  ;;  %v1238_v28 = vmul.f32 %v2782_v27, %v3483_v63  ;;  %v1276_v44 = vadd.f32 %v3621_v21, %v1256_v25 }
 0x52a   :  { %2793 = vrsqrt.f32 %v1212_v31  ;;  %v1198_v37 = vmul.f32 0.015625, %v1174_v33  ;;  %v1171_v47 = vpop.xlane.xlu0 %1170  ;;  %v1275_v9 = vadd.f32 %v3621_v21, %v1255_v61  ;;  %v1237_v50 = vmul.f32 %v2784_v1, %v3487_v8 }
 0x52b   :  { %2795 = vrsqrt.f32 %v1211_v38  ;;  %v1197_v35 = vmul.f32 0.015625, %v1171_v47  ;;  %v1258_v51 = vmul.f32 %v3614_v42, %v1238_v28 }
 0x52c   :  { %v2786_v45 = vpop.eup %2785  ;;  %v1214_v19 = vadd.f32 1e-05, %v1198_v37  ;;  %2481 = vmatprep.mubr.msk.f32.mxu1 %vm323_vm1, %v1275_v9  ;;  %v1257_v52 = vmul.f32 %v3614_v42, %v1237_v50 }
 0x52d   :  { %v2788_v63 = vpop.eup %2787  ;;  %v1213_v56 = vadd.f32 1e-05, %v1197_v35  ;;  %v1180_v57 = vpop.xlane.xlu1 %1179  ;;  %2482 = vmatmul.mubr.msk.f32.vlgmr.msra.gmra.mrb[16].mxu1 %vm323_vm1, %v1276_v44  ;;  %v1240_v36 = vmul.f32 %v2786_v45, %v3495_v20  ;;  %v1278_v0 = vadd.f32 %v3621_v21, %v1258_v51 }
 0x52e   :  { %2797 = vrsqrt.f32 %v1214_v19  ;;  %v1200_v8 = vmul.f32 0.015625, %v1180_v57  ;;  %v1177_v2 = vpop.xlane.xlu0 %1176  ;;  %v1277_v5 = vadd.f32 %v3621_v21, %v1257_v52  ;;  %v1239_v49 = vmul.f32 %v2788_v63, %v3499_v39  ;;  %2673 = vmatpush3.bf16.msra.mxu1 %v3589_v60 }
 0x52f   :  { %2799 = vrsqrt.f32 %v1213_v56  ;;  %v1199_v7 = vmul.f32 0.015625, %v1177_v2  ;;  %v1260_v16 = vmul.f32 %v3614_v42, %v1240_v36  ;;  %2666 = vmatprep.subr.bf16.mxu1 %v3594_v6 }
 0x530   :  { %v2790_v3 = vpop.eup %2789  ;;  %v1216_v25 = vadd.f32 1e-05, %v1200_v8  ;;  %2484 = vmatprep.mubr.msk.f32.mxu1 %vm323_vm1, %v1277_v5  ;;  %v1259_v20 = vmul.f32 %v3614_v42, %v1239_v49 }
 0x531   :  { %v2792_v10 = vpop.eup %2791  ;;  %v1215_v27 = vadd.f32 1e-05, %v1199_v7  ;;  %v1186_v31 = vpop.xlane.xlu1 %1185  ;;  %2485 = vmatmul.mubr.msk.f32.gmra.mrb[18].mxu1 %vm323_vm1, %v1278_v0  ;;  %v1242_v39 = vmul.f32 %v2790_v3, %v3507_v14  ;;  %v1280_v28 = vadd.f32 %v3621_v21, %v1260_v16 }
 0x532   :  { %2801 = vrsqrt.f32 %v1216_v25  ;;  %v1202_v60 = vmul.f32 0.015625, %v1186_v31  ;;  %v1183_v61 = vpop.xlane.xlu0 %1182  ;;  %v1279_v1 = vadd.f32 %v3621_v21, %v1259_v20  ;;  %v1241_v38 = vmul.f32 %v2792_v10, %v3511_v41  ;;  %2674 = vmatpush3.bf16.msra.mxu1 %v3594_v6 }
 0x533   :  { %2803 = vrsqrt.f32 %v1215_v27  ;;  %v1201_v33 = vmul.f32 0.015625, %v1183_v61  ;;  %v1262_v37 = vmul.f32 %v3614_v42, %v1242_v39  ;;  %2667 = vmatprep.subr.bf16.mxu1 %v3606_v48 }
 0x534   :  { %v2794_v47 = vpop.eup %2793  ;;  %v1218_v9 = vadd.f32 1e-05, %v1202_v60  ;;  %2487 = vmatprep.mubr.msk.f32.mxu1 %vm323_vm1, %v1279_v1  ;;  %v1261_v14 = vmul.f32 %v3614_v42, %v1241_v38  ;;  %v2194_v1 = vld [vmem:[%s4116_s4 + $0xd0] sm:$0xff]  ;;  %v2195_v38 = vld [vmem:[%s4116_s4 + $0xd8] sm:$0xff] }
 0x535   :  { %v2796_v50 = vpop.eup %2795  ;;  %v1217_v44 = vadd.f32 1e-05, %v1201_v33  ;;  %2488 = vmatmul.mubr.msk.f32.gmra.mrb[20].mxu1 %vm323_vm1, %v1280_v28  ;;  %v1244_v41 = vmul.f32 %v2794_v47, %v3519_v29  ;;  %v1282_v51 = vadd.f32 %v3621_v21, %v1262_v37  ;;  %v2653_v33 = vpack.c.bf16 %v2195_v38, %v2194_v1  ;;  %v2196_v28 = vld [vmem:[%s4116_s4 + $0xe0] sm:$0xff]  ;;  %v2197_v37 = vld [vmem:[%s4116_s4 + $0xe8] sm:$0xff] }
 0x536   :  { %2805 = vrsqrt.f32 %v1218_v9  ;;  %v1281_v6 = vadd.f32 %v3621_v21, %v1261_v14  ;;  %v1243_v35 = vmul.f32 %v2796_v50, %v3523_v24  ;;  %2675 = vmatpush3.bf16.msra.mxu1 %v3606_v48  ;;  %v2657_v47 = vpack.c.bf16 %v2197_v37, %v2196_v28  ;;  %v2198_v9 = vld [vmem:[%s4116_s4 + $0xf0] sm:$0xff]  ;;  %v2199_v14 = vld [vmem:[%s4116_s4 + $0xf8] sm:$0xff] }
 0x537   :  { %2807 = vrsqrt.f32 %v1217_v44  ;;  %v1264_v45 = vmul.f32 %v3614_v42, %v1244_v41  ;;  %v2661_v50 = vpack.c.bf16 %v2199_v14, %v2198_v9  ;;  %v3723_v44 = vld [vmem:[%s4114_s1 + $0xa] ss:$0 sm:$0xff] }
 0x538   :  { %v2798_v19 = vpop.eup %2797  ;;  %2490 = vmatprep.mubr.msk.f32.mxu1 %vm323_vm1, %v1281_v6  ;;  %v1263_v52 = vmul.f32 %v3614_v42, %v1243_v35 }
 0x539   :  { %v2800_v63 = vpop.eup %2799  ;;  %2491 = vmatmul.mubr.msk.f32.gmra.mrb[22].mxu1 %vm323_vm1, %v1282_v51  ;;  %v1246_v29 = vmul.f32 %v2798_v19, %v3531_v22  ;;  %v1284_v48 = vadd.f32 %v3621_v21, %v1264_v45 }
 0x53a   :  { %v1283_v56 = vadd.f32 %v3621_v21, %v1263_v52  ;;  %v1245_v24 = vmul.f32 %v2800_v63, %v3535_v32 }
 0x53b   :  { %v1266_v57 = vmul.f32 %v3614_v42, %v1246_v29 }
 0x53c   :  { %v2802_v36 = vpop.eup %2801  ;;  %2493 = vmatprep.mubr.msk.f32.mxu1 %vm323_vm1, %v1283_v56  ;;  %v1265_v8 = vmul.f32 %v3614_v42, %v1245_v24 }
 0x53d   :  { %v2804_v2 = vpop.eup %2803  ;;  %2494 = vmatmul.mubr.msk.f32.gmra.mrb[24].mxu1 %vm323_vm1, %v1284_v48  ;;  %v1248_v5 = vmul.f32 %v2802_v36, %v3543_v15  ;;  %v1286_v32 = vadd.f32 %v3621_v21, %v1266_v57 }
 0x53e   :  { %v1285_v22 = vadd.f32 %v3621_v21, %v1265_v8  ;;  %v1247_v49 = vmul.f32 %v2804_v2, %v3547_v23 }
 0x53f   :  { %v1268_v7 = vmul.f32 %v3614_v42, %v1248_v5 }
 0x540   :  { %v2806_v0 = vpop.eup %2805  ;;  %2496 = vmatprep.mubr.msk.f32.mxu1 %vm323_vm1, %v1285_v22  ;;  %v1267_v16 = vmul.f32 %v3614_v42, %v1247_v49 }
 0x541   :  { %v2808_v3 = vpop.eup %2807  ;;  %2497 = vmatmul.mubr.msk.f32.gmra.mrb[26].mxu1 %vm323_vm1, %v1286_v32  ;;  %v1250_v25 = vmul.f32 %v2806_v0, %v3555_v34  ;;  %v1288_v23 = vadd.f32 %v3621_v21, %v1268_v7  ;;  %v2190_v34 = vld [vmem:[%s4116_s4 + $0xb0] sm:$0xff] }
 0x542   :  { %v1287_v15 = vadd.f32 %v3621_v21, %v1267_v16  ;;  %v1249_v20 = vmul.f32 %v2808_v3, %v3559_v18  ;;  %v2191_v18 = vld [vmem:[%s4116_s4 + $0xb8] sm:$0xff] }
 0x543   :  { %v1270_v10 = vmul.f32 %v3614_v42, %v1250_v25  ;;  %v2645_v60 = vpack.c.bf16 %v2191_v18, %v2190_v34 }
 0x544   :  { %2499 = vmatprep.mubr.msk.f32.mxu1 %vm323_vm1, %v1287_v15  ;;  %v1269_v27 = vmul.f32 %v3614_v42, %v1249_v20  ;;  %v2192_v42 = vld [vmem:[%s4116_s4 + $0xc0] sm:$0xff] }
 0x545   :  { %2500 = vmatmul.mubr.msk.f32.gmra.mrb[28].mxu1 %vm323_vm1, %v1288_v23  ;;  %v1290_v39 = vadd.f32 %v3621_v21, %v1270_v10  ;;  %2646 = vmatprep.subr.bf16.mxu0 %v2645_v60 }
 0x546   :  { %v1289_v31 = vadd.f32 %v3621_v21, %v1269_v27  ;;  %2668 = vmatprep.subr.bf16.mxu1 %v2645_v60  ;;  %2648 = vmatpush3.bf16.msra.mxu0 %v2645_v60  ;;  %v2193_v21 = vld [vmem:[%s4116_s4 + $0xc8] sm:$0xff] }
 0x547   :  { %2676 = vmatpush3.bf16.msra.mxu1 %v2645_v60  ;;  %v2649_v61 = vpack.c.bf16 %v2193_v21, %v2192_v42 }
 0x548   :  { %2502 = vmatprep.mubr.msk.f32.mxu1 %vm323_vm1, %v1289_v31 }
 0x549   :  { %2503 = vmatmul.mubr.msk.f32.gmra.mrb[30].mxu1 %vm323_vm1, %v1290_v39  ;;  %2650 = vmatprep.subr.bf16.mxu0 %v2649_v61 }
 0x54a   :  { %2669 = vmatprep.subr.bf16.mxu1 %v2649_v61  ;;  %2652 = vmatpush3.bf16.msra.mxu0 %v2649_v61 }
 0x54b   :  { %2677 = vmatpush3.bf16.msra.mxu1 %v2649_v61  ;;  %2654 = vmatprep.subr.bf16.mxu0 %v2653_v33 }
 0x54c   :  { %2670 = vmatprep.subr.bf16.mxu1 %v2653_v33 }
 0x54e   :  { %2656 = vmatpush3.bf16.msra.mxu0 %v2653_v33 }
 0x54f   :  { %2678 = vmatpush3.bf16.msra.mxu1 %v2653_v33  ;;  %2658 = vmatprep.subr.bf16.mxu0 %v2657_v47 }
 0x550   :  { %2671 = vmatprep.subr.bf16.mxu1 %v2657_v47 }
 0x552   :  { %2660 = vmatpush3.bf16.msra.mxu0 %v2657_v47 }
 0x553   :  { %2679 = vmatpush3.bf16.msra.mxu1 %v2657_v47  ;;  %2662 = vmatprep.subr.bf16.mxu0 %v2661_v50 }
 0x554   :  { %2672 = vmatprep.subr.bf16.mxu1 %v2661_v50 }
 0x556   :  { %2664 = vmatpush3.bf16.msra.mxu0 %v2661_v50 }
 0x557   :  { %2680 = vmatpush3.bf16.msra.mxu1 %v2661_v50 }
 0x600   :  { %v2483_v41 = vpop.f32.mrb[16].mxu1 }
 0x601   :  { %v1424_v6 = vadd.f32 %v2483_v41, %v3723_v44  ;;  %v1418_v35 = vpop.f32.mrb[17].mxu1 }
 0x602   :  { %v1419_v51 = vadd.f32 %v3723_v44, %v1418_v35 }
 0x603   :  { %v1514_v45 = vmul.f32 0.70710677, %v1424_v6  ;;  %v1498_v34 = vmul.f32 0.5, %v1424_v6 }
 0x604   :  { %v1513_v19 = vmul.f32 0.70710677, %v1419_v51  ;;  %v2486_v52 = vpop.f32.mrb[18].mxu1  ;;  %v1497_v10 = vmul.f32 0.5, %v1419_v51 }
 0x605   :  { %2809 = verf.f32 %v1514_v45  ;;  %v1434_v63 = vadd.f32 %v2486_v52, %v3723_v44  ;;  %v1428_v29 = vpop.f32.mrb[19].mxu1 }
 0x606   :  { %2811 = verf.f32 %v1513_v19  ;;  %v1429_v56 = vadd.f32 %v3723_v44, %v1428_v29 }
 0x607   :  { %v1516_v24 = vmul.f32 0.70710677, %v1434_v63  ;;  %v1500_v50 = vmul.f32 0.5, %v1434_v63 }
 0x608   :  { %v1515_v48 = vmul.f32 0.70710677, %v1429_v56  ;;  %v2489_v57 = vpop.f32.mrb[20].mxu1  ;;  %v1499_v37 = vmul.f32 0.5, %v1429_v56 }
 0x609   :  { %2813 = verf.f32 %v1516_v24  ;;  %v1444_v36 = vadd.f32 %v2489_v57, %v3723_v44  ;;  %v1438_v8 = vpop.f32.mrb[21].mxu1 }
 0x60a   :  { %2815 = verf.f32 %v1515_v48  ;;  %v1439_v2 = vadd.f32 %v3723_v44, %v1438_v8 }
 0x60b   :  { %v1518_v5 = vmul.f32 0.70710677, %v1444_v36  ;;  %v1502_v63 = vmul.f32 0.5, %v1444_v36 }
 0x60c   :  { %v1517_v22 = vmul.f32 0.70710677, %v1439_v2  ;;  %v2492_v49 = vpop.f32.mrb[22].mxu1  ;;  %v1501_v24 = vmul.f32 0.5, %v1439_v2 }
 0x60d   :  { %2817 = verf.f32 %v1518_v5  ;;  %v3732_v32 = vadd.f32 %v2492_v49, %v3723_v44  ;;  %v1448_v7 = vpop.f32.mrb[23].mxu1 }
 0x60e   :  { %2819 = verf.f32 %v1517_v22  ;;  %v1449_v0 = vadd.f32 %v3723_v44, %v1448_v7 }
 0x60f   :  { %v2810_v16 = vpop.eup %2809  ;;  %v1520_v3 = vmul.f32 0.70710677, %v3732_v32  ;;  %v1504_v36 = vmul.f32 0.5, %v3732_v32 }
 0x610   :  { %v2812_v25 = vpop.eup %2811  ;;  %v1546_v15 = vadd.f32 1.0, %v2810_v16  ;;  %v1519_v20 = vmul.f32 0.70710677, %v1449_v0  ;;  %v2495_v23 = vpop.f32.mrb[24].mxu1  ;;  %v1503_v2 = vmul.f32 0.5, %v1449_v0 }
 0x611   :  { %v1545_v27 = vadd.f32 1.0, %v2812_v25  ;;  %2821 = verf.f32 %v1520_v3  ;;  %v3737_v31 = vadd.f32 %v2495_v23, %v3723_v44  ;;  %v1458_v39 = vpop.f32.mrb[25].mxu1 }
 0x612   :  { %2823 = verf.f32 %v1519_v20  ;;  %v1459_v18 = vadd.f32 %v3723_v44, %v1458_v39  ;;  %v1562_v1 = vmul.f32 %v1546_v15, %v1498_v34 }
 0x613   :  { %v2814_v60 = vpop.eup %2813  ;;  %v1522_v42 = vmul.f32 0.70710677, %v3737_v31  ;;  %v1561_v21 = vmul.f32 %v1545_v27, %v1497_v10 }
 0x614   :  { %v2816_v61 = vpop.eup %2815  ;;  %v1548_v38 = vadd.f32 1.0, %v2814_v60  ;;  %v1521_v33 = vmul.f32 0.70710677, %v1459_v18  ;;  %v2498_v28 = vpop.f32.mrb[26].mxu1  ;;  %v1505_v0 = vmul.f32 0.5, %v1459_v18 }
 0x615   :  { %v1547_v47 = vadd.f32 1.0, %v2816_v61  ;;  %2825 = verf.f32 %v1522_v42  ;;  %v3742_v9 = vadd.f32 %v2498_v28, %v3723_v44  ;;  %v1468_v14 = vpop.f32.mrb[27].mxu1  ;;  %2537 = vmatprep.mubr.f32.mxu0 %v1561_v21  ;;  %v1506_v28 = vmul.f32 0.5, %v3737_v31 }
 0x616   :  { %2827 = verf.f32 %v1521_v33  ;;  %v1469_v41 = vadd.f32 %v3723_v44, %v1468_v14  ;;  %2538 = vmatmul.mubr.f32.vlgmr.msra.gmra.mrb[32].mxu0 %v1562_v1  ;;  %v1564_v56 = vmul.f32 %v1548_v38, %v1500_v50 }
 0x617   :  { %v2818_v6 = vpop.eup %2817  ;;  %v1524_v35 = vmul.f32 0.70710677, %v3742_v9  ;;  %v1563_v51 = vmul.f32 %v1547_v47, %v1499_v37 }
 0x618   :  { %v2820_v45 = vpop.eup %2819  ;;  %v1550_v19 = vadd.f32 1.0, %v2818_v6  ;;  %v1523_v52 = vmul.f32 0.70710677, %v1469_v41  ;;  %v2501_v29 = vpop.f32.mrb[28].mxu1  ;;  %v1507_v50 = vmul.f32 0.5, %v1469_v41 }
 0x619   :  { %v1549_v48 = vadd.f32 1.0, %v2820_v45  ;;  %2829 = verf.f32 %v1524_v35  ;;  %v1484_v57 = vadd.f32 %v2501_v29, %v3723_v44  ;;  %v1478_v8 = vpop.f32.mrb[29].mxu1  ;;  %2540 = vmatprep.mubr.f32.mxu0 %v1563_v51  ;;  %v1508_v35 = vmul.f32 0.5, %v3742_v9 }
 0x61a   :  { %2831 = verf.f32 %v1523_v52  ;;  %v1479_v5 = vadd.f32 %v3723_v44, %v1478_v8  ;;  %2541 = vmatmul.mubr.f32.gmra.mrb[34].mxu0 %v1564_v56  ;;  %v1566_v20 = vmul.f32 %v1550_v19, %v1502_v63 }
 0x61b   :  { %v2822_v22 = vpop.eup %2821  ;;  %v1526_v49 = vmul.f32 0.70710677, %v1484_v57  ;;  %v1565_v7 = vmul.f32 %v1549_v48, %v1501_v24  ;;  %v1510_v56 = vmul.f32 0.5, %v1484_v57 }
 0x61c   :  { %v2824_v16 = vpop.eup %2823  ;;  %v1552_v3 = vadd.f32 1.0, %v2822_v22  ;;  %v1525_v25 = vmul.f32 0.70710677, %v1479_v5  ;;  %v2504_v15 = vpop.f32.mrb[30].mxu1  ;;  %v1509_v29 = vmul.f32 0.5, %v1479_v5 }
 0x61d   :  { %v1551_v23 = vadd.f32 1.0, %v2824_v16  ;;  %2833 = verf.f32 %v1526_v49  ;;  %v1494_v10 = vadd.f32 %v2504_v15, %v3723_v44  ;;  %v1488_v27 = vpop.f32.mrb[31].mxu1  ;;  %2543 = vmatprep.mubr.f32.mxu0 %v1565_v7  ;;  %v3756_v5 = vld [vmem:[%s4114_s1 + $0xc] ss:$0 sm:$0xff] }
 0x61e   :  { %2835 = verf.f32 %v1525_v25  ;;  %v1489_v39 = vadd.f32 %v3723_v44, %v1488_v27  ;;  %2544 = vmatmul.mubr.f32.gmra.mrb[36].mxu0 %v1566_v20  ;;  %v1568_v38 = vmul.f32 %v1552_v3, %v1504_v36 }
 0x61f   :  { %v2826_v34 = vpop.eup %2825  ;;  %v1528_v60 = vmul.f32 0.70710677, %v1494_v10  ;;  %v1567_v42 = vmul.f32 %v1551_v23, %v1503_v2  ;;  %v1512_v9 = vmul.f32 0.5, %v1494_v10 }
 0x620   :  { %v2828_v21 = vpop.eup %2827  ;;  %v1554_v61 = vadd.f32 1.0, %v2826_v34  ;;  %v1527_v1 = vmul.f32 0.70710677, %v1489_v39  ;;  %v1511_v22 = vmul.f32 0.5, %v1489_v39 }
 0x621   :  { %v1553_v33 = vadd.f32 1.0, %v2828_v21  ;;  %2837 = verf.f32 %v1528_v60  ;;  %2546 = vmatprep.mubr.f32.mxu0 %v1567_v42 }
 0x622   :  { %2839 = verf.f32 %v1527_v1  ;;  %2547 = vmatmul.mubr.f32.gmra.mrb[38].mxu0 %v1568_v38  ;;  %v1570_v14 = vmul.f32 %v1554_v61, %v1506_v28 }
 0x623   :  { %v2830_v32 = vpop.eup %2829  ;;  %v1569_v37 = vmul.f32 %v1553_v33, %v1505_v0 }
 0x624   :  { %v2832_v47 = vpop.eup %2831  ;;  %v1556_v44 = vadd.f32 1.0, %v2830_v32 }
 0x625   :  { %v1555_v6 = vadd.f32 1.0, %v2832_v47  ;;  %2549 = vmatprep.mubr.f32.mxu0 %v1569_v37 }
 0x626   :  { %2550 = vmatmul.mubr.f32.gmra.mrb[40].mxu0 %v1570_v14  ;;  %v1572_v19 = vmul.f32 %v1556_v44, %v1508_v35 }
 0x627   :  { %v2834_v51 = vpop.eup %2833  ;;  %v1571_v18 = vmul.f32 %v1555_v6, %v1507_v50 }
 0x628   :  { %v2836_v45 = vpop.eup %2835  ;;  %v1558_v52 = vadd.f32 1.0, %v2834_v51 }
 0x629   :  { %v1557_v31 = vadd.f32 1.0, %v2836_v45  ;;  %2552 = vmatprep.mubr.f32.mxu1 %v1571_v18 }
 0x62a   :  { %2553 = vmatmul.mubr.f32.vlgmr.msra.gmra.mrb[32].mxu1 %v1572_v19  ;;  %v1574_v41 = vmul.f32 %v1558_v52, %v1510_v56 }
 0x62b   :  { %v2838_v24 = vpop.eup %2837  ;;  %v1573_v48 = vmul.f32 %v1557_v31, %v1509_v29 }
 0x62c   :  { %v2840_v8 = vpop.eup %2839  ;;  %v1560_v63 = vadd.f32 1.0, %v2838_v24 }
 0x62d   :  { %v1559_v49 = vadd.f32 1.0, %v2840_v8  ;;  %2555 = vmatprep.mubr.f32.mxu1 %v1573_v48 }
 0x62e   :  { %2556 = vmatmul.mubr.f32.gmra.mrb[34].mxu1 %v1574_v41  ;;  %v1576_v16 = vmul.f32 %v1560_v63, %v1512_v9 }
 0x62f   :  { %v1575_v7 = vmul.f32 %v1559_v49, %v1511_v22 }
 0x631   :  { %2558 = vmatprep.mubr.f32.mxu1 %v1575_v7 }
 0x632   :  { %2559 = vmatmul.mubr.f32.gmra.mrb[36].mxu1 %v1576_v16 }
 0x6e9   :  { %v2539_v57 = vpop.f32.mrb[32].mxu0 }
 0x6ea   :  { %v1670_v3 = vadd.f32 %v2539_v57, %v3756_v5  ;;  %v1664_v25 = vpop.f32.mrb[33].mxu0 }
 0x6eb   :  { %v1665_v15 = vadd.f32 %v3756_v5, %v1664_v25 }
 0x6ec   :  { %v3761_v20 = vadd.f32 %v1670_v3, %v3367_v55 }
 0x6ed   :  { %v2542_v2 = vpop.f32.mrb[34].mxu0  ;;  %v3764_v23 = vadd.f32 %v1665_v15, %v3370_v40 }
 0x6ee   :  { %v1680_v10 = vadd.f32 %v2542_v2, %v3756_v5  ;;  %v1674_v27 = vpop.f32.mrb[35].mxu0  ;;  %v1764_v36 = vsel %vm323_vm1, %v3761_v20, 0.0 }
 0x6ef   :  { %v1675_v39 = vadd.f32 %v3756_v5, %v1674_v27  ;;  %1765 = vadd.xlane.f32.xlu1 %v1764_v36  ;;  %v1761_v34 = vsel %vm323_vm1, %v3764_v23, 0.0 }
 0x6f0   :  { %1762 = vadd.xlane.f32.xlu0 %v1761_v34  ;;  %v3773_v55 = vadd.f32 %v1680_v10, %v3379_v62 }
 0x6f1   :  { %v2545_v60 = vpop.f32.mrb[36].mxu0  ;;  %v3776_v40 = vadd.f32 %v1675_v39, %v3382_v59 }
 0x6f2   :  { %v1690_v42 = vadd.f32 %v2545_v60, %v3756_v5  ;;  %v1684_v21 = vpop.f32.mrb[37].mxu0  ;;  %v1770_v61 = vsel %vm323_vm1, %v3773_v55, 0.0 }
 0x6f3   :  { %v1685_v1 = vadd.f32 %v3756_v5, %v1684_v21  ;;  %1771 = vadd.xlane.f32.xlu1 %v1770_v61  ;;  %v1767_v38 = vsel %vm323_vm1, %v3776_v40, 0.0 }
 0x6f4   :  { %1768 = vadd.xlane.f32.xlu0 %v1767_v38  ;;  %v3785_v62 = vadd.f32 %v1690_v42, %v3391_v13 }
 0x6f5   :  { %v2548_v0 = vpop.f32.mrb[38].mxu0  ;;  %v3788_v59 = vadd.f32 %v1685_v1, %v3394_v11 }
 0x6f6   :  { %v1700_v33 = vadd.f32 %v2548_v0, %v3756_v5  ;;  %v1694_v28 = vpop.f32.mrb[39].mxu0  ;;  %v1776_v32 = vsel %vm323_vm1, %v3785_v62, 0.0 }
 0x6f7   :  { %v1695_v37 = vadd.f32 %v3756_v5, %v1694_v28  ;;  %1777 = vadd.xlane.f32.xlu1 %v1776_v32  ;;  %v1773_v47 = vsel %vm323_vm1, %v3788_v59, 0.0 }
 0x6f8   :  { %1774 = vadd.xlane.f32.xlu0 %v1773_v47  ;;  %v3797_v13 = vadd.f32 %v1700_v33, %v3403_v30 }
 0x6f9   :  { %v2551_v44 = vpop.f32.mrb[40].mxu0  ;;  %v3800_v11 = vadd.f32 %v1695_v37, %v3406_v26 }
 0x6fa   :  { %v1710_v14 = vadd.f32 %v2551_v44, %v3756_v5  ;;  %v1704_v50 = vpop.f32.mrb[41].mxu0  ;;  %v1782_v6 = vsel %vm323_vm1, %v3797_v13, 0.0 }
 0x6fb   :  { %v1705_v35 = vadd.f32 %v3756_v5, %v1704_v50  ;;  %1783 = vadd.xlane.f32.xlu1 %v1782_v6  ;;  %v1779_v51 = vsel %vm323_vm1, %v3800_v11, 0.0 }
 0x6fc   :  { %1780 = vadd.xlane.f32.xlu0 %v1779_v51  ;;  %v3809_v30 = vadd.f32 %v1710_v14, %v3415_v46 }
 0x6fd   :  { %v2554_v18 = vpop.f32.mrb[32].mxu1  ;;  %v3812_v26 = vadd.f32 %v1705_v35, %v3418_v43 }
 0x6fe   :  { %v1720_v45 = vadd.f32 %v2554_v18, %v3756_v5  ;;  %v1714_v19 = vpop.f32.mrb[33].mxu1  ;;  %v1788_v52 = vsel %vm323_vm1, %v3809_v30, 0.0 }
 0x6ff   :  { %v1715_v29 = vadd.f32 %v3756_v5, %v1714_v19  ;;  %1789 = vadd.xlane.f32.xlu1 %v1788_v52  ;;  %v1785_v31 = vsel %vm323_vm1, %v3812_v26, 0.0 }
 0x700   :  { %1786 = vadd.xlane.f32.xlu0 %v1785_v31  ;;  %v3821_v46 = vadd.f32 %v1720_v45, %v3427_v58 }
 0x701   :  { %v2557_v56 = vpop.f32.mrb[34].mxu1  ;;  %v3824_v43 = vadd.f32 %v1715_v29, %v3430_v54 }
 0x702   :  { %v1730_v24 = vadd.f32 %v2557_v56, %v3756_v5  ;;  %v1724_v48 = vpop.f32.mrb[35].mxu1  ;;  %v1794_v8 = vsel %vm323_vm1, %v3821_v46, 0.0 }
 0x703   :  { %v1725_v63 = vadd.f32 %v3756_v5, %v1724_v48  ;;  %1795 = vadd.xlane.f32.xlu1 %v1794_v8  ;;  %v1791_v41 = vsel %vm323_vm1, %v3824_v43, 0.0 }
 0x704   :  { %1792 = vadd.xlane.f32.xlu0 %v1791_v41  ;;  %v3833_v58 = vadd.f32 %v1730_v24, %v3439_v4 }
 0x705   :  { %v2560_v22 = vpop.f32.mrb[36].mxu1  ;;  %v3836_v54 = vadd.f32 %v1725_v63, %v3442_v53 }
 0x706   :  { %v1740_v49 = vadd.f32 %v2560_v22, %v3756_v5  ;;  %v1734_v9 = vpop.f32.mrb[37].mxu1  ;;  %v1800_v7 = vsel %vm323_vm1, %v3833_v58, 0.0 }
 0x707   :  { %v1735_v16 = vadd.f32 %v3756_v5, %v1734_v9  ;;  %1801 = vadd.xlane.f32.xlu1 %v1800_v7  ;;  %v1797_v57 = vsel %vm323_vm1, %v3836_v54, 0.0 }
 0x708   :  { %1798 = vadd.xlane.f32.xlu0 %v1797_v57  ;;  %v3845_v4 = vadd.f32 %v1740_v49, %v3451_v17 }
 0x709   :  { %v3848_v3 = vadd.f32 %v1735_v16, %v3454_v12 }
 0x70a   :  { %v1806_v53 = vsel %vm323_vm1, %v3845_v4, 0.0 }
 0x70b   :  { %1807 = vadd.xlane.f32.xlu1 %v1806_v53  ;;  %v1803_v25 = vsel %vm323_vm1, %v3848_v3, 0.0 }
 0x70c   :  { %1804 = vadd.xlane.f32.xlu0 %v1803_v25 }
 0x77c   :  { %v1766_v5 = vpop.xlane.xlu1 %1765 }
 0x77d   :  { %v1810_v15 = vmul.f32 0.015625, %v1766_v5  ;;  %v1763_v2 = vpop.xlane.xlu0 %1762 }
 0x77e   :  { %v1809_v10 = vmul.f32 0.015625, %v1763_v2 }
 0x77f   :  { %v3855_v27 = vsub.f32 %v3761_v20, %v1810_v15 }
 0x780   :  { %v3858_v17 = vsub.f32 %v3764_v23, %v1809_v10  ;;  %v1772_v12 = vpop.xlane.xlu1 %1771 }
 0x781   :  { %v1812_v36 = vmul.f32 0.015625, %v1772_v12  ;;  %v1769_v39 = vpop.xlane.xlu0 %1768  ;;  %v1842_v34 = vmul.f32 %v3855_v27, %v3855_v27 }
 0x782   :  { %v1811_v60 = vmul.f32 0.015625, %v1769_v39  ;;  %v1841_v42 = vmul.f32 %v3858_v17, %v3858_v17 }
 0x783   :  { %v3865_v21 = vsub.f32 %v3773_v55, %v1812_v36  ;;  %v1860_v61 = vsel %vm323_vm1, %v1842_v34, 0.0 }
 0x784   :  { %v3869_v20 = vsub.f32 %v3776_v40, %v1811_v60  ;;  %v1778_v23 = vpop.xlane.xlu1 %1777  ;;  %1861 = vadd.xlane.f32.xlu1 %v1860_v61  ;;  %v1857_v1 = vsel %vm323_vm1, %v1841_v42, 0.0 }
 0x785   :  { %v1814_v38 = vmul.f32 0.015625, %v1778_v23  ;;  %1858 = vadd.xlane.f32.xlu0 %v1857_v1  ;;  %v1775_v0 = vpop.xlane.xlu0 %1774  ;;  %v1844_v33 = vmul.f32 %v3865_v21, %v3865_v21 }
 0x786   :  { %v1813_v28 = vmul.f32 0.015625, %v1775_v0  ;;  %v1843_v55 = vmul.f32 %v3869_v20, %v3869_v20 }
 0x787   :  { %v3877_v32 = vsub.f32 %v3785_v62, %v1814_v38  ;;  %v1866_v40 = vsel %vm323_vm1, %v1844_v33, 0.0 }
 0x788   :  { %v3881_v37 = vsub.f32 %v3788_v59, %v1813_v28  ;;  %v1784_v47 = vpop.xlane.xlu1 %1783  ;;  %1867 = vadd.xlane.f32.xlu1 %v1866_v40  ;;  %v1863_v44 = vsel %vm323_vm1, %v1843_v55, 0.0 }
 0x789   :  { %v1816_v14 = vmul.f32 0.015625, %v1784_v47  ;;  %1864 = vadd.xlane.f32.xlu0 %v1863_v44  ;;  %v1781_v50 = vpop.xlane.xlu0 %1780  ;;  %v1846_v6 = vmul.f32 %v3877_v32, %v3877_v32 }
 0x78a   :  { %v1815_v35 = vmul.f32 0.015625, %v1781_v50  ;;  %v1845_v62 = vmul.f32 %v3881_v37, %v3881_v37 }
 0x78b   :  { %v3889_v51 = vsub.f32 %v3797_v13, %v1816_v14  ;;  %v1872_v59 = vsel %vm323_vm1, %v1846_v6, 0.0 }
 0x78c   :  { %v3893_v18 = vsub.f32 %v3800_v11, %v1815_v35  ;;  %v1790_v45 = vpop.xlane.xlu1 %1789  ;;  %1873 = vadd.xlane.f32.xlu1 %v1872_v59  ;;  %v1869_v19 = vsel %vm323_vm1, %v1845_v62, 0.0 }
 0x78d   :  { %v1818_v52 = vmul.f32 0.015625, %v1790_v45  ;;  %1870 = vadd.xlane.f32.xlu0 %v1869_v19  ;;  %v1787_v29 = vpop.xlane.xlu0 %1786  ;;  %v1848_v31 = vmul.f32 %v3889_v51, %v3889_v51 }
 0x78e   :  { %v1817_v56 = vmul.f32 0.015625, %v1787_v29  ;;  %v1847_v13 = vmul.f32 %v3893_v18, %v3893_v18 }
 0x78f   :  { %v3901_v24 = vsub.f32 %v3809_v30, %v1818_v52  ;;  %v1878_v11 = vsel %vm323_vm1, %v1848_v31, 0.0 }
 0x790   :  { %v3905_v48 = vsub.f32 %v3812_v26, %v1817_v56  ;;  %v1796_v8 = vpop.xlane.xlu1 %1795  ;;  %1879 = vadd.xlane.f32.xlu1 %v1878_v11  ;;  %v1875_v63 = vsel %vm323_vm1, %v1847_v13, 0.0 }
 0x791   :  { %v1820_v41 = vmul.f32 0.015625, %v1796_v8  ;;  %1876 = vadd.xlane.f32.xlu0 %v1875_v63  ;;  %v1793_v22 = vpop.xlane.xlu0 %1792  ;;  %v1850_v49 = vmul.f32 %v3901_v24, %v3901_v24 }
 0x792   :  { %v1819_v9 = vmul.f32 0.015625, %v1793_v22  ;;  %v1849_v30 = vmul.f32 %v3905_v48, %v3905_v48 }
 0x793   :  { %v3913_v7 = vsub.f32 %v3821_v46, %v1820_v41  ;;  %v1884_v26 = vsel %vm323_vm1, %v1850_v49, 0.0 }
 0x794   :  { %v3917_v16 = vsub.f32 %v3824_v43, %v1819_v9  ;;  %v1802_v57 = vpop.xlane.xlu1 %1801  ;;  %1885 = vadd.xlane.f32.xlu1 %v1884_v26  ;;  %v1881_v53 = vsel %vm323_vm1, %v1849_v30, 0.0  ;;  %v3953_v9 = vld [vmem:[%s4114_s1 + $0x1] ss:$0 sm:$0xff] }
 0x795   :  { %v1822_v25 = vmul.f32 0.015625, %v1802_v57  ;;  %1882 = vadd.xlane.f32.xlu0 %v1881_v53  ;;  %v1799_v5 = vpop.xlane.xlu0 %1798  ;;  %v1852_v15 = vmul.f32 %v3913_v7, %v3913_v7 }
 0x796   :  { %v1821_v2 = vmul.f32 0.015625, %v1799_v5  ;;  %v1851_v46 = vmul.f32 %v3917_v16, %v3917_v16 }
 0x797   :  { %v3925_v10 = vsub.f32 %v3833_v58, %v1822_v25  ;;  %v1890_v43 = vsel %vm323_vm1, %v1852_v15, 0.0  ;;  %v3959_v15 = vld [vmem:[%s4114_s1 + $0x2] ss:$0 sm:$0xff] }
 0x798   :  { %v3929_v12 = vsub.f32 %v3836_v54, %v1821_v2  ;;  %1891 = vadd.xlane.f32.xlu1 %v1890_v43  ;;  %v1808_v36 = vpop.xlane.xlu1 %1807  ;;  %v1887_v39 = vsel %vm323_vm1, %v1851_v46, 0.0 }
 0x799   :  { %v1824_v34 = vmul.f32 0.015625, %v1808_v36  ;;  %1888 = vadd.xlane.f32.xlu0 %v1887_v39  ;;  %v1805_v60 = vpop.xlane.xlu0 %1804  ;;  %v1854_v42 = vmul.f32 %v3925_v10, %v3925_v10 }
 0x79a   :  { %v1823_v61 = vmul.f32 0.015625, %v1805_v60  ;;  %v1853_v58 = vmul.f32 %v3929_v12, %v3929_v12 }
 0x79b   :  { %v3937_v23 = vsub.f32 %v3845_v4, %v1824_v34  ;;  %v1896_v54 = vsel %vm323_vm1, %v1854_v42, 0.0 }
 0x79c   :  { %v3941_v1 = vsub.f32 %v3848_v3, %v1823_v61  ;;  %1897 = vadd.xlane.f32.xlu1 %v1896_v54  ;;  %v1893_v38 = vsel %vm323_vm1, %v1853_v58, 0.0 }
 0x79d   :  { %1894 = vadd.xlane.f32.xlu0 %v1893_v38  ;;  %v1856_v0 = vmul.f32 %v3937_v23, %v3937_v23 }
 0x79e   :  { %v1855_v33 = vmul.f32 %v3941_v1, %v3941_v1 }
 0x79f   :  { %v1902_v28 = vsel %vm323_vm1, %v1856_v0, 0.0 }
 0x7a0   :  { %1903 = vadd.xlane.f32.xlu1 %v1902_v28  ;;  %v1899_v4 = vsel %vm323_vm1, %v1855_v33, 0.0 }
 0x7a1   :  { %1900 = vadd.xlane.f32.xlu0 %v1899_v4 }
 0x811   :  { %v1862_v55 = vpop.xlane.xlu1 %1861 }
 0x812   :  { %v1906_v40 = vmul.f32 0.015625, %v1862_v55  ;;  %v1859_v3 = vpop.xlane.xlu0 %1858 }
 0x813   :  { %v1905_v47 = vmul.f32 0.015625, %v1859_v3 }
 0x814   :  { %v1922_v44 = vadd.f32 1e-05, %v1906_v40 }
 0x815   :  { %v1921_v14 = vadd.f32 1e-05, %v1905_v47  ;;  %v1868_v50 = vpop.xlane.xlu1 %1867 }
 0x816   :  { %2841 = vrsqrt.f32 %v1922_v44  ;;  %v1908_v6 = vmul.f32 0.015625, %v1868_v50  ;;  %v1865_v35 = vpop.xlane.xlu0 %1864 }
 0x817   :  { %2843 = vrsqrt.f32 %v1921_v14  ;;  %v1907_v62 = vmul.f32 0.015625, %v1865_v35 }
 0x818   :  { %v1924_v59 = vadd.f32 1e-05, %v1908_v6 }
 0x819   :  { %v1923_v45 = vadd.f32 1e-05, %v1907_v62  ;;  %v1874_v19 = vpop.xlane.xlu1 %1873 }
 0x81a   :  { %2845 = vrsqrt.f32 %v1924_v59  ;;  %v1910_v52 = vmul.f32 0.015625, %v1874_v19  ;;  %v1871_v29 = vpop.xlane.xlu0 %1870 }
 0x81b   :  { %2847 = vrsqrt.f32 %v1923_v45  ;;  %v1909_v31 = vmul.f32 0.015625, %v1871_v29 }
 0x81c   :  { %v1926_v56 = vadd.f32 1e-05, %v1910_v52 }
 0x81d   :  { %v1925_v13 = vadd.f32 1e-05, %v1909_v31  ;;  %v1880_v11 = vpop.xlane.xlu1 %1879 }
 0x81e   :  { %2849 = vrsqrt.f32 %v1926_v56  ;;  %v1912_v8 = vmul.f32 0.015625, %v1880_v11  ;;  %v1877_v63 = vpop.xlane.xlu0 %1876 }
 0x81f   :  { %2851 = vrsqrt.f32 %v1925_v13  ;;  %v1911_v41 = vmul.f32 0.015625, %v1877_v63 }
 0x820   :  { %v2842_v22 = vpop.eup %2841  ;;  %v1928_v49 = vadd.f32 1e-05, %v1912_v8 }
 0x821   :  { %v2844_v30 = vpop.eup %2843  ;;  %v1927_v26 = vadd.f32 1e-05, %v1911_v41  ;;  %v1886_v57 = vpop.xlane.xlu1 %1885  ;;  %v1954_v53 = vmul.f32 %v2842_v22, %v3855_v27  ;;  %v3966_v27 = vld [vmem:[%s4114_s1 + $0x3] ss:$0 sm:$0xff] }
 0x822   :  { %2853 = vrsqrt.f32 %v1928_v49  ;;  %v1914_v25 = vmul.f32 0.015625, %v1886_v57  ;;  %v1883_v5 = vpop.xlane.xlu0 %1882  ;;  %v1953_v2 = vmul.f32 %v2844_v30, %v3858_v17 }
 0x823   :  { %2855 = vrsqrt.f32 %v1927_v26  ;;  %v1913_v46 = vmul.f32 0.015625, %v1883_v5  ;;  %v1974_v43 = vmul.f32 %v3953_v9, %v1954_v53 }
 0x824   :  { %v2846_v36 = vpop.eup %2845  ;;  %v1930_v39 = vadd.f32 1e-05, %v1914_v25  ;;  %v1973_v34 = vmul.f32 %v3953_v9, %v1953_v2 }
 0x825   :  { %v2848_v60 = vpop.eup %2847  ;;  %v1929_v42 = vadd.f32 1e-05, %v1913_v46  ;;  %v1892_v61 = vpop.xlane.xlu1 %1891  ;;  %v1994_v58 = vadd.f32 %v3959_v15, %v1974_v43  ;;  %v1956_v17 = vmul.f32 %v2846_v36, %v3865_v21 }
 0x826   :  { %2857 = vrsqrt.f32 %v1930_v39  ;;  %v1916_v54 = vmul.f32 0.015625, %v1892_v61  ;;  %v1889_v38 = vpop.xlane.xlu0 %1888  ;;  %v1993_v0 = vadd.f32 %v3959_v15, %v1973_v34  ;;  %v1955_v33 = vmul.f32 %v2848_v60, %v3869_v20 }
 0x827   :  { %2859 = vrsqrt.f32 %v1929_v42  ;;  %v1915_v28 = vmul.f32 0.015625, %v1889_v38  ;;  %v2016_v4 = vmul.f32 %v3966_v27, %v1994_v58  ;;  %v1976_v55 = vmul.f32 %v3953_v9, %v1956_v17 }
 0x828   :  { %v2850_v40 = vpop.eup %2849  ;;  %v1932_v3 = vadd.f32 1e-05, %v1916_v54  ;;  %v2015_v47 = vmul.f32 %v3966_v27, %v1993_v0  ;;  %v1975_v44 = vmul.f32 %v3953_v9, %v1955_v33 }
 0x829   :  { %v2852_v21 = vpop.eup %2851  ;;  %v1931_v14 = vadd.f32 1e-05, %v1915_v28  ;;  %v1898_v50 = vpop.xlane.xlu1 %1897  ;;  %v2034_v6 = vsel %vm323_vm1, %v2016_v4, 0.0  ;;  %v1996_v35 = vadd.f32 %v3959_v15, %v1976_v55  ;;  %v1958_v20 = vmul.f32 %v2850_v40, %v3877_v32 }
 0x82a   :  { %2861 = vrsqrt.f32 %v1932_v3  ;;  %v1918_v62 = vmul.f32 0.015625, %v1898_v50  ;;  %2035 = vadd.xlane.f32.xlu1 %v2034_v6  ;;  %v1895_v59 = vpop.xlane.xlu0 %1894  ;;  %v2031_v45 = vsel %vm323_vm1, %v2015_v47, 0.0  ;;  %v1995_v19 = vadd.f32 %v3959_v15, %v1975_v44 }
 0x82b   :  { %2863 = vrsqrt.f32 %v1931_v14  ;;  %v1917_v52 = vmul.f32 0.015625, %v1895_v59  ;;  %2032 = vadd.xlane.f32.xlu0 %v2031_v45  ;;  %v2018_v29 = vmul.f32 %v3966_v27, %v1996_v35  ;;  %v1978_v31 = vmul.f32 %v3953_v9, %v1958_v20 }
 0x82c   :  { %v2854_v56 = vpop.eup %2853  ;;  %v1934_v13 = vadd.f32 1e-05, %v1918_v62  ;;  %v2017_v11 = vmul.f32 %v3966_v27, %v1995_v19  ;;  %v1957_v32 = vmul.f32 %v2852_v21, %v3881_v37 }
 0x82d   :  { %v2856_v8 = vpop.eup %2855  ;;  %v1933_v63 = vadd.f32 1e-05, %v1917_v52  ;;  %v1904_v41 = vpop.xlane.xlu1 %1903  ;;  %v2040_v22 = vsel %vm323_vm1, %v2018_v29, 0.0  ;;  %v1998_v49 = vadd.f32 %v3959_v15, %v1978_v31  ;;  %v1960_v30 = vmul.f32 %v2854_v56, %v3889_v51 }
 0x82e   :  { %2865 = vrsqrt.f32 %v1934_v13  ;;  %v1920_v26 = vmul.f32 0.015625, %v1904_v41  ;;  %2041 = vadd.xlane.f32.xlu1 %v2040_v22  ;;  %v1901_v57 = vpop.xlane.xlu0 %1900  ;;  %v2037_v53 = vsel %vm323_vm1, %v2017_v11, 0.0  ;;  %v1977_v25 = vmul.f32 %v3953_v9, %v1957_v32 }
 0x82f   :  { %2867 = vrsqrt.f32 %v1933_v63  ;;  %v1919_v5 = vmul.f32 0.015625, %v1901_v57  ;;  %2038 = vadd.xlane.f32.xlu0 %v2037_v53  ;;  %v2020_v37 = vmul.f32 %v3966_v27, %v1998_v49  ;;  %v1980_v2 = vmul.f32 %v3953_v9, %v1960_v30 }
 0x830   :  { %v2858_v46 = vpop.eup %2857  ;;  %v1936_v43 = vadd.f32 1e-05, %v1920_v26  ;;  %v1997_v36 = vadd.f32 %v3959_v15, %v1977_v25  ;;  %v1959_v51 = vmul.f32 %v2856_v8, %v3893_v18 }
 0x831   :  { %v2860_v39 = vpop.eup %2859  ;;  %v1935_v34 = vadd.f32 1e-05, %v1919_v5  ;;  %v2046_v60 = vsel %vm323_vm1, %v2020_v37, 0.0  ;;  %v2000_v42 = vadd.f32 %v3959_v15, %v1980_v2  ;;  %v1962_v61 = vmul.f32 %v2858_v46, %v3901_v24  ;;  %v2204_v46 = vld [vmem:[%s4114_s1 + $0x4] ss:$0 sm:$0xff] }
 0x832   :  { %2869 = vrsqrt.f32 %v1936_v43  ;;  %2047 = vadd.xlane.f32.xlu1 %v2046_v60  ;;  %v2019_v58 = vmul.f32 %v3966_v27, %v1997_v36  ;;  %v1979_v17 = vmul.f32 %v3953_v9, %v1959_v51  ;;  %v1961_v54 = vmul.f32 %v2860_v39, %v3905_v48 }
 0x833   :  { %2871 = vrsqrt.f32 %v1935_v34  ;;  %v2022_v38 = vmul.f32 %v3966_v27, %v2000_v42  ;;  %v1982_v18 = vmul.f32 %v3953_v9, %v1962_v61 }
 0x834   :  { %v2862_v0 = vpop.eup %2861  ;;  %v2043_v33 = vsel %vm323_vm1, %v2019_v58, 0.0  ;;  %v1999_v28 = vadd.f32 %v3959_v15, %v1979_v17  ;;  %v1981_v24 = vmul.f32 %v3953_v9, %v1961_v54 }
 0x835   :  { %v2864_v4 = vpop.eup %2863  ;;  %2044 = vadd.xlane.f32.xlu0 %v2043_v33  ;;  %v2052_v55 = vsel %vm323_vm1, %v2022_v38, 0.0  ;;  %v2002_v40 = vadd.f32 %v3959_v15, %v1982_v18  ;;  %v1964_v48 = vmul.f32 %v2862_v0, %v3913_v7 }
 0x836   :  { %2053 = vadd.xlane.f32.xlu1 %v2052_v55  ;;  %v2021_v3 = vmul.f32 %v3966_v27, %v1999_v28  ;;  %v2001_v47 = vadd.f32 %v3959_v15, %v1981_v24  ;;  %v1963_v44 = vmul.f32 %v2864_v4, %v3917_v16 }
 0x837   :  { %v2024_v21 = vmul.f32 %v3966_v27, %v2002_v40  ;;  %v1984_v14 = vmul.f32 %v3953_v9, %v1964_v48 }
 0x838   :  { %v2866_v50 = vpop.eup %2865  ;;  %v2049_v6 = vsel %vm323_vm1, %v2021_v3, 0.0  ;;  %v2023_v35 = vmul.f32 %v3966_v27, %v2001_v47  ;;  %v1983_v20 = vmul.f32 %v3953_v9, %v1963_v44 }
 0x839   :  { %v2868_v62 = vpop.eup %2867  ;;  %2050 = vadd.xlane.f32.xlu0 %v2049_v6  ;;  %v2058_v7 = vsel %vm323_vm1, %v2024_v21, 0.0  ;;  %v2004_v59 = vadd.f32 %v3959_v15, %v1984_v14  ;;  %v1966_v45 = vmul.f32 %v2866_v50, %v3925_v10 }
 0x83a   :  { %2059 = vadd.xlane.f32.xlu1 %v2058_v7  ;;  %v2055_v16 = vsel %vm323_vm1, %v2023_v35, 0.0  ;;  %v2003_v19 = vadd.f32 %v3959_v15, %v1983_v20  ;;  %v1965_v52 = vmul.f32 %v2868_v62, %v3929_v12 }
 0x83b   :  { %v2026_v29 = vmul.f32 %v3966_v27, %v2004_v59  ;;  %v1986_v31 = vmul.f32 %v3953_v9, %v1966_v45 }
 0x83c   :  { %v2870_v56 = vpop.eup %2869  ;;  %v2025_v13 = vmul.f32 %v3966_v27, %v2003_v19  ;;  %v1985_v11 = vmul.f32 %v3953_v9, %v1965_v52 }
 0x83d   :  { %v2872_v32 = vpop.eup %2871  ;;  %2056 = vadd.xlane.f32.xlu0 %v2055_v16  ;;  %v2064_v10 = vsel %vm323_vm1, %v2026_v29, 0.0  ;;  %v2006_v8 = vadd.f32 %v3959_v15, %v1986_v31  ;;  %v1968_v63 = vmul.f32 %v2870_v56, %v3937_v23 }
 0x83e   :  { %2065 = vadd.xlane.f32.xlu1 %v2064_v10  ;;  %v2061_v12 = vsel %vm323_vm1, %v2025_v13, 0.0  ;;  %v2005_v41 = vadd.f32 %v3959_v15, %v1985_v11  ;;  %v1967_v22 = vmul.f32 %v2872_v32, %v3941_v1 }
 0x83f   :  { %v2028_v49 = vmul.f32 %v3966_v27, %v2006_v8  ;;  %v1988_v30 = vmul.f32 %v3953_v9, %v1968_v63 }
 0x840   :  { %v2027_v26 = vmul.f32 %v3966_v27, %v2005_v41  ;;  %v1987_v57 = vmul.f32 %v3953_v9, %v1967_v22 }
 0x841   :  { %2062 = vadd.xlane.f32.xlu0 %v2061_v12  ;;  %v2070_v53 = vsel %vm323_vm1, %v2028_v49, 0.0  ;;  %v2008_v23 = vadd.f32 %v3959_v15, %v1988_v30 }
 0x842   :  { %2071 = vadd.xlane.f32.xlu1 %v2070_v53  ;;  %v2067_v25 = vsel %vm323_vm1, %v2027_v26, 0.0  ;;  %v2007_v5 = vadd.f32 %v3959_v15, %v1987_v57 }
 0x843   :  { %v2030_v1 = vmul.f32 %v3966_v27, %v2008_v23 }
 0x844   :  { %v2029_v37 = vmul.f32 %v3966_v27, %v2007_v5 }
 0x845   :  { %2068 = vadd.xlane.f32.xlu0 %v2067_v25  ;;  %v2076_v2 = vsel %vm323_vm1, %v2030_v1, 0.0 }
 0x846   :  { %2077 = vadd.xlane.f32.xlu1 %v2076_v2  ;;  %v2073_v9 = vsel %vm323_vm1, %v2029_v37, 0.0 }
 0x849   :  { %2074 = vadd.xlane.f32.xlu0 %v2073_v9 }
 0x8b7   :  { %v2036_v43 = vpop.xlane.xlu1 %2035 }
 0x8b8   :  { %v2084_v36 = vadd.f32 %v2204_v46, %v2036_v43  ;;  %v2033_v51 = vpop.xlane.xlu0 %2032 }
 0x8b9   :  { %v2083_v15 = vadd.f32 %v2204_v46, %v2033_v51 }
 0x8ba   :  { %2101 = vst.msk [vmem:[%s4117_s5 + $0x8] sm:$0xff] %vm2099_vm2, %v2084_v36 }
 0x8bb   :  { %2100 = vst.msk [vmem:[%s4117_s5] sm:$0xff] %vm2099_vm2, %v2083_v15  ;;  %v2042_v27 = vpop.xlane.xlu1 %2041 }
 0x8bc   :  { %v2086_v39 = vadd.f32 %v2204_v46, %v2042_v27  ;;  %v2039_v34 = vpop.xlane.xlu0 %2038 }
 0x8bd   :  { %v2085_v60 = vadd.f32 %v2204_v46, %v2039_v34 }
 0x8be   :  { %2103 = vst.msk [vmem:[%s4117_s5 + $0x18] sm:$0xff] %vm2099_vm2, %v2086_v39 }
 0x8bf   :  { %2102 = vst.msk [vmem:[%s4117_s5 + $0x10] sm:$0xff] %vm2099_vm2, %v2085_v60  ;;  %v2048_v42 = vpop.xlane.xlu1 %2047 }
 0x8c0   :  { %v2088_v61 = vadd.f32 %v2204_v46, %v2048_v42 }
 0x8c2   :  { %2105 = vst.msk [vmem:[%s4117_s5 + $0x28] sm:$0xff] %vm2099_vm2, %v2088_v61  ;;  %v2045_v58 = vpop.xlane.xlu0 %2044 }
 0x8c3   :  { %v2087_v17 = vadd.f32 %v2204_v46, %v2045_v58  ;;  %v2054_v54 = vpop.xlane.xlu1 %2053 }
 0x8c4   :  { %v2090_v38 = vadd.f32 %v2204_v46, %v2054_v54 }
 0x8c5   :  { %2104 = vst.msk [vmem:[%s4117_s5 + $0x20] sm:$0xff] %vm2099_vm2, %v2087_v17 }
 0x8c6   :  { %2107 = vst.msk [vmem:[%s4117_s5 + $0x38] sm:$0xff] %vm2099_vm2, %v2090_v38  ;;  %v2051_v18 = vpop.xlane.xlu0 %2050 }
 0x8c7   :  { %v2089_v0 = vadd.f32 %v2204_v46, %v2051_v18  ;;  %v2060_v33 = vpop.xlane.xlu1 %2059 }
 0x8c8   :  { %v2092_v28 = vadd.f32 %v2204_v46, %v2060_v33 }
 0x8c9   :  { %2106 = vst.msk [vmem:[%s4117_s5 + $0x30] sm:$0xff] %vm2099_vm2, %v2089_v0 }
 0x8ca   :  { %2109 = vst.msk [vmem:[%s4117_s5 + $0x48] sm:$0xff] %vm2099_vm2, %v2092_v28  ;;  %v2057_v24 = vpop.xlane.xlu0 %2056 }
 0x8cb   :  { %v2091_v4 = vadd.f32 %v2204_v46, %v2057_v24  ;;  %v2066_v55 = vpop.xlane.xlu1 %2065 }
 0x8cc   :  { %v2094_v40 = vadd.f32 %v2204_v46, %v2066_v55 }
 0x8cd   :  { %2108 = vst.msk [vmem:[%s4117_s5 + $0x40] sm:$0xff] %vm2099_vm2, %v2091_v4 }
 0x8ce   :  { %2111 = vst.msk [vmem:[%s4117_s5 + $0x58] sm:$0xff] %vm2099_vm2, %v2094_v40  ;;  %v2063_v48 = vpop.xlane.xlu0 %2062 }
 0x8cf   :  { %v2093_v3 = vadd.f32 %v2204_v46, %v2063_v48  ;;  %v2072_v47 = vpop.xlane.xlu1 %2071 }
 0x8d0   :  { %v2096_v44 = vadd.f32 %v2204_v46, %v2072_v47 }
 0x8d1   :  { %2110 = vst.msk [vmem:[%s4117_s5 + $0x50] sm:$0xff] %vm2099_vm2, %v2093_v3 }
 0x8d2   :  { %2113 = vst.msk [vmem:[%s4117_s5 + $0x68] sm:$0xff] %vm2099_vm2, %v2096_v44  ;;  %v2069_v21 = vpop.xlane.xlu0 %2068 }
 0x8d3   :  { %v2095_v14 = vadd.f32 %v2204_v46, %v2069_v21  ;;  %v2078_v50 = vpop.xlane.xlu1 %2077 }
 0x8d4   :  { %v2098_v6 = vadd.f32 %v2204_v46, %v2078_v50 }
 0x8d5   :  { %2112 = vst.msk [vmem:[%s4117_s5 + $0x60] sm:$0xff] %vm2099_vm2, %v2095_v14 }
 0x8d6   :  { %2115 = vst.msk [vmem:[%s4117_s5 + $0x78] sm:$0xff] %vm2099_vm2, %v2098_v6  ;;  %v2075_v35 = vpop.xlane.xlu0 %2074 }
 0x8d7   :  { %v2097_v20 = vadd.f32 %v2204_v46, %v2075_v35 }
 0x8d9   :  { %2114 = vst.msk [vmem:[%s4117_s5 + $0x70] sm:$0xff] %vm2099_vm2, %v2097_v20 }

</bundles_post_ra>
